<compile_context>
chip_gen: v7x
topology: tpu7x:2x2x1
jax: 0.10.0
libtpu: 0.0.40
codegen_flags: <defaults>
</compile_context>

<pallas_src>
import jax
import jax.numpy as jnp
from jax.experimental import pallas as pl
from jax.experimental.pallas import tpu as pltpu

IN_F = 28 * 28     # 784
H1_F = 512
H2_F = 100
OUT_F = 10
H2_PAD = 128       # 100 -> 128 (lane multiple)
OUT_PAD = 128      # 10  -> 128 (lane-dense output store)
TM = 512           # default batch rows per grid step (review: 512-1024)


def _round_up(x, m):
    return ((x + m - 1) // m) * m


def mlp_kernel(x_ref, w1_ref, b1_ref, w2_ref, b2_ref, w3_ref, b3_ref, out_ref):
    # fc1 (+folded BN1) + ReLU.  bf16 MXU inputs, f32 accumulation.
    x = x_ref[...].astype(jnp.bfloat16)
    h1 = jnp.dot(x, w1_ref[...], preferred_element_type=jnp.float32) + b1_ref[...]
    h1 = jnp.maximum(h1, 0.0).astype(jnp.bfloat16)   # bf16 cross-layer value
    # fc2 (+folded BN2) + ReLU (K/N padded to 128 lanes; padded cols stay 0).
    h2 = jnp.dot(h1, w2_ref[...], preferred_element_type=jnp.float32) + b2_ref[...]
    h2 = jnp.maximum(h2, 0.0).astype(jnp.bfloat16)
    # fc3 -> padded bf16 logits; real logits live in columns [:10].
    out = jnp.dot(h2, w3_ref[...], preferred_element_type=jnp.float32) + b3_ref[...]
    out_ref[...] = out.astype(out_ref.dtype)


def make_params(key):
    """Deterministic synthetic parameters matching the torch module shapes."""
    ks = jax.random.split(key, 12)
    p = {}
    # Linear(784, 512): torch weight is (512, 784); store transposed (784, 512).
    p["w1"] = jax.random.normal(ks[0], (IN_F, H1_F), jnp.float32) * 0.02
    p["b1"] = jax.random.normal(ks[1], (H1_F,), jnp.float32) * 0.01
    # BatchNorm1d(512)
    p["g1"] = 1.0 + 0.1 * jax.random.normal(ks[2], (H1_F,), jnp.float32)
    p["beta1"] = 0.05 * jax.random.normal(ks[3], (H1_F,), jnp.float32)
    p["rm1"] = 0.05 * jax.random.normal(ks[4], (H1_F,), jnp.float32)
    p["rv1"] = 1.0 + 0.1 * jax.random.uniform(ks[5], (H1_F,), jnp.float32)
    # Linear(512, 100)
    p["w2"] = jax.random.normal(ks[6], (H1_F, H2_F), jnp.float32) * 0.02
    p["b2"] = jax.random.normal(ks[7], (H2_F,), jnp.float32) * 0.01
    # BatchNorm1d(100)
    p["g2"] = 1.0 + 0.1 * jax.random.normal(ks[8], (H2_F,), jnp.float32)
    p["beta2"] = 0.05 * jax.random.normal(ks[9], (H2_F,), jnp.float32)
    p["rm2"] = 0.05 * jax.random.normal(ks[10], (H2_F,), jnp.float32)
    p["rv2"] = 1.0 + 0.1 * jax.random.uniform(ks[11], (H2_F,), jnp.float32)
    # Linear(100, 10)
    p["w3"] = jax.random.normal(jax.random.fold_in(key, 99), (H2_F, OUT_F), jnp.float32) * 0.05
    p["b3"] = jax.random.normal(jax.random.fold_in(key, 100), (OUT_F,), jnp.float32) * 0.01
    return p


def fold_bn(gamma, beta, rmean, rvar, eps=1e-5):
    scale = gamma / jnp.sqrt(rvar + eps)
    shift = beta - rmean * scale
    return scale, shift


def prepare_operands(params):
    """Fold eval-mode BN into weights/biases, pad to lane multiples, cast weights to bf16."""
    s1, t1 = fold_bn(params["g1"], params["beta1"], params["rm1"], params["rv1"])
    s2, t2 = fold_bn(params["g2"], params["beta2"], params["rm2"], params["rv2"])

    w1 = params["w1"] * s1[None, :]          # (784, 512)
    b1 = params["b1"] * s1 + t1              # (512,)
    w2 = params["w2"] * s2[None, :]          # (512, 100)
    b2 = params["b2"] * s2 + t2              # (100,)
    w3 = params["w3"]                        # (100, 10)
    b3 = params["b3"]                        # (10,)

    # Zero-pad feature dims 100 -> 128 and 10 -> 128.  Padded hidden columns are
    # exactly 0 after ReLU (0*x + 0), padded logit columns are sliced off in glue.
    w2p = jnp.zeros((H1_F, H2_PAD), jnp.float32).at[:, :H2_F].set(w2)
    b2p = jnp.zeros((H2_PAD,), jnp.float32).at[:H2_F].set(b2)
    w3p = jnp.zeros((H2_PAD, OUT_PAD), jnp.float32).at[:H2_F, :OUT_F].set(w3)
    b3p = jnp.zeros((OUT_PAD,), jnp.float32).at[:OUT_F].set(b3)

    row = lambda v: v.reshape(1, -1).astype(jnp.float32)
    return (w1.astype(jnp.bfloat16), row(b1),
            w2p.astype(jnp.bfloat16), row(b2p),
            w3p.astype(jnp.bfloat16), row(b3p))


def neural_network_forward(x_nchw, params, block_m=TM):
    B = x_nchw.shape[0]
    # nn.Flatten(); keep the caller's dtype (feed bf16 from upstream if it can
    # be produced there for free -- no standalone astype pass is added here).
    x2d = x_nchw.reshape(B, -1)

    # Batch tile: as large as requested but not (much) past the batch; when the
    # whole batch would fit in one grid step, split it in two so the "parallel"
    # batch axis can be sharded across v7x's 2 TensorCores.
    bm = min(block_m, _round_up(B, 8))
    if pl.cdiv(B, bm) < 2 and B >= 16:
        bm = _round_up(pl.cdiv(B, 2), 8)
    n_blocks = pl.cdiv(B, bm)   # ragged last block handled by Pallas (no jnp.pad copy)

    w1, b1, w2, b2, w3, b3 = prepare_operands(params)

    resident = lambda i: (0, 0)   # weights/biases keep the same block every step

    flops = 2 * B * (IN_F * H1_F + H1_F * H2_PAD + H2_PAD * OUT_PAD)
    bytes_accessed = (x2d.size * x2d.dtype.itemsize                   # x stream
                      + B * OUT_PAD * 2                               # bf16 logits
                      + (w1.size + w2.size + w3.size) * 2             # bf16 weights
                      + (b1.size + b2.size + b3.size) * 4)            # f32 biases

    out = pl.pallas_call(
        mlp_kernel,
        out_shape=jax.ShapeDtypeStruct((B, OUT_PAD), jnp.bfloat16),
        grid=(n_blocks,),
        in_specs=[
            pl.BlockSpec((bm, IN_F), lambda i: (i, 0)),    # x tile (double-buffered)
            pl.BlockSpec((IN_F, H1_F), resident),          # w1 (bf16, BN folded)
            pl.BlockSpec((1, H1_F), resident),             # b1 (f32, BN folded)
            pl.BlockSpec((H1_F, H2_PAD), resident),        # w2 (bf16, padded)
            pl.BlockSpec((1, H2_PAD), resident),           # b2 (padded)
            pl.BlockSpec((H2_PAD, OUT_PAD), resident),     # w3 (bf16, padded)
            pl.BlockSpec((1, OUT_PAD), resident),          # b3 (padded)
        ],
        out_specs=pl.BlockSpec((bm, OUT_PAD), lambda i: (i, 0)),
        compiler_params=pltpu.CompilerParams(
            dimension_semantics=("parallel",)),
        cost_estimate=pl.CostEstimate(
            flops=flops, transcendentals=0, bytes_accessed=bytes_accessed),
    )(x2d, w1, b1, w2, b2, w3, b3)

    # Real logits live in columns [:10]; return f32 like the torch module.
    return out[:, :OUT_F].astype(jnp.float32)


def reference_forward(x_nchw, params):
    """Pure-JAX f32 reference mirroring the torch module in eval mode."""
    B = x_nchw.shape[0]
    x = x_nchw.reshape(B, -1).astype(jnp.float32)
    s1, t1 = fold_bn(params["g1"], params["beta1"], params["rm1"], params["rv1"])
    s2, t2 = fold_bn(params["g2"], params["beta2"], params["rm2"], params["rv2"])
    h = jnp.maximum((x @ params["w1"] + params["b1"]) * s1 + t1, 0.0)
    h = jnp.maximum((h @ params["w2"] + params["b2"]) * s2 + t2, 0.0)
    return h @ params["w3"] + params["b3"]


if __name__ == "__main__":
    key = jax.random.PRNGKey(0)
    k_x, k_p = jax.random.split(key)

    # Small but grid-exercising batch: the wrapper splits 200 rows into two
    # 104-row grid steps, with a ragged last block (exercises the no-pad
    # boundary-masking path and the 2-step "parallel" batch axis).
    B = 200
    x = jax.random.normal(k_x, (B, 1, 28, 28), jnp.float32)   # NCHW, FashionMNIST shape
    params = make_params(k_p)

    logits = neural_network_forward(x, params)
    logits = jax.block_until_ready(logits)

    ref = reference_forward(x, params)
    assert logits.shape == (B, OUT_F)
    # bf16 weights / activations / logit store vs the f32 reference -> loosened tolerance.
    assert jnp.allclose(logits, ref, atol=3e-2, rtol=3e-2), "mismatch vs reference"

    print("KERNEL_OK")
</pallas_src>

<mosaic_0001>
module attributes {stable_mosaic.version = 11 : i64} {
  func.func @mlp_kernel(%arg0: i32, %arg1: memref<104x784xf32, #tpu.memory_space<vmem>>, %arg2: memref<784x512xbf16, #tpu.memory_space<vmem>>, %arg3: memref<1x512xf32, #tpu.memory_space<vmem>>, %arg4: memref<512x128xbf16, #tpu.memory_space<vmem>>, %arg5: memref<1x128xf32, #tpu.memory_space<vmem>>, %arg6: memref<128x128xbf16, #tpu.memory_space<vmem>>, %arg7: memref<1x128xf32, #tpu.memory_space<vmem>>, %arg8: memref<104x128xbf16, #tpu.memory_space<vmem>>) attributes {dimension_semantics = [#tpu.dimension_semantics<parallel>], iteration_bounds = array<i64: 2>, scalar_prefetch = 0 : i64, scratch_operands = 0 : i64, tpu.core_type = #tpu.core_type<tc>, window_params = [{transform_indices = @transform_0, window_bounds = array<i64: 104, 784>}, {pipeline_mode = #tpu.pipeline_mode<synchronous>, transform_indices = @transform_1, window_bounds = array<i64: 784, 512>}, {pipeline_mode = #tpu.pipeline_mode<synchronous>, transform_indices = @transform_2, window_bounds = array<i64: 1, 512>}, {pipeline_mode = #tpu.pipeline_mode<synchronous>, transform_indices = @transform_3, window_bounds = array<i64: 512, 128>}, {pipeline_mode = #tpu.pipeline_mode<synchronous>, transform_indices = @transform_4, window_bounds = array<i64: 1, 128>}, {pipeline_mode = #tpu.pipeline_mode<synchronous>, transform_indices = @transform_5, window_bounds = array<i64: 128, 128>}, {pipeline_mode = #tpu.pipeline_mode<synchronous>, transform_indices = @transform_6, window_bounds = array<i64: 1, 128>}, {transform_indices = @transform_7, window_bounds = array<i64: 104, 128>}]} {
    %c0 = arith.constant 0 : index
    %c0_0 = arith.constant 0 : index
    %0 = vector.load %arg1[%c0, %c0_0] : memref<104x784xf32, #tpu.memory_space<vmem>>, vector<104x784xf32>
    %1 = arith.truncf %0 : vector<104x784xf32> to vector<104x784xbf16>
    %c0_1 = arith.constant 0 : index
    %c0_2 = arith.constant 0 : index
    %2 = vector.load %arg2[%c0_1, %c0_2] : memref<784x512xbf16, #tpu.memory_space<vmem>>, vector<784x512xbf16>
    %cst = arith.constant dense<0.000000e+00> : vector<104x512xf32>
    %3 = tpu.matmul %1, %2, %cst {dimension_numbers = #tpu.dot_dimension_numbers<[1], [0], [0], [1], [0, 0, 1, 1], [], []>} : vector<104x784xbf16>, vector<784x512xbf16>, vector<104x512xf32> -> vector<104x512xf32>
    %c0_3 = arith.constant 0 : index
    %c0_4 = arith.constant 0 : index
    %4 = vector.load %arg3[%c0_3, %c0_4] : memref<1x512xf32, #tpu.memory_space<vmem>>, vector<1x512xf32>
    %5 = vector.broadcast %4 : vector<1x512xf32> to vector<104x512xf32>
    %6 = arith.addf %3, %5 : vector<104x512xf32>
    %cst_5 = arith.constant 0.000000e+00 : f32
    %7 = vector.broadcast %cst_5 : f32 to vector<104x512xf32>
    %8 = arith.maximumf %6, %7 : vector<104x512xf32>
    %9 = arith.truncf %8 : vector<104x512xf32> to vector<104x512xbf16>
    %c0_6 = arith.constant 0 : index
    %c0_7 = arith.constant 0 : index
    %10 = vector.load %arg4[%c0_6, %c0_7] : memref<512x128xbf16, #tpu.memory_space<vmem>>, vector<512x128xbf16>
    %cst_8 = arith.constant dense<0.000000e+00> : vector<104x128xf32>
    %11 = tpu.matmul %9, %10, %cst_8 {dimension_numbers = #tpu.dot_dimension_numbers<[1], [0], [0], [1], [0, 0, 1, 1], [], []>} : vector<104x512xbf16>, vector<512x128xbf16>, vector<104x128xf32> -> vector<104x128xf32>
    %c0_9 = arith.constant 0 : index
    %c0_10 = arith.constant 0 : index
    %12 = vector.load %arg5[%c0_9, %c0_10] : memref<1x128xf32, #tpu.memory_space<vmem>>, vector<1x128xf32>
    %13 = vector.broadcast %12 : vector<1x128xf32> to vector<104x128xf32>
    %14 = arith.addf %11, %13 : vector<104x128xf32>
    %cst_11 = arith.constant 0.000000e+00 : f32
    %15 = vector.broadcast %cst_11 : f32 to vector<104x128xf32>
    %16 = arith.maximumf %14, %15 : vector<104x128xf32>
    %17 = arith.truncf %16 : vector<104x128xf32> to vector<104x128xbf16>
    %c0_12 = arith.constant 0 : index
    %c0_13 = arith.constant 0 : index
    %18 = vector.load %arg6[%c0_12, %c0_13] : memref<128x128xbf16, #tpu.memory_space<vmem>>, vector<128x128xbf16>
    %cst_14 = arith.constant dense<0.000000e+00> : vector<104x128xf32>
    %19 = tpu.matmul %17, %18, %cst_14 {dimension_numbers = #tpu.dot_dimension_numbers<[1], [0], [0], [1], [0, 0, 1, 1], [], []>} : vector<104x128xbf16>, vector<128x128xbf16>, vector<104x128xf32> -> vector<104x128xf32>
    %c0_15 = arith.constant 0 : index
    %c0_16 = arith.constant 0 : index
    %20 = vector.load %arg7[%c0_15, %c0_16] : memref<1x128xf32, #tpu.memory_space<vmem>>, vector<1x128xf32>
    %21 = vector.broadcast %20 : vector<1x128xf32> to vector<104x128xf32>
    %22 = arith.addf %19, %21 : vector<104x128xf32>
    %23 = arith.truncf %22 : vector<104x128xf32> to vector<104x128xbf16>
    %c0_17 = arith.constant 0 : index
    %c0_18 = arith.constant 0 : index
    %24 = vector.load %arg8[%c0_17, %c0_18] : memref<104x128xbf16, #tpu.memory_space<vmem>>, vector<104x128xbf16>
    tpu.vector_store %arg8[%c0_17, %c0_18], %23 {strides = array<i32>} : memref<104x128xbf16, #tpu.memory_space<vmem>>, vector<104x128xbf16>,
    return
  }
  func.func @transform_0(%arg0: i32) -> (i32, i32) {
    %c0_i32 = arith.constant 0 : i32
    %c0_i32_0 = arith.constant 0 : i32
    return %arg0, %c0_i32 : i32, i32
  }
  func.func @transform_1(%arg0: i32) -> (i32, i32) {
    %c0_i32 = arith.constant 0 : i32
    %c0_i32_0 = arith.constant 0 : i32
    %c0_i32_1 = arith.constant 0 : i32
    return %c0_i32, %c0_i32_0 : i32, i32
  }
  func.func @transform_2(%arg0: i32) -> (i32, i32) {
    %c0_i32 = arith.constant 0 : i32
    %c0_i32_0 = arith.constant 0 : i32
    %c0_i32_1 = arith.constant 0 : i32
    return %c0_i32, %c0_i32_0 : i32, i32
  }
  func.func @transform_3(%arg0: i32) -> (i32, i32) {
    %c0_i32 = arith.constant 0 : i32
    %c0_i32_0 = arith.constant 0 : i32
    %c0_i32_1 = arith.constant 0 : i32
    return %c0_i32, %c0_i32_0 : i32, i32
  }
  func.func @transform_4(%arg0: i32) -> (i32, i32) {
    %c0_i32 = arith.constant 0 : i32
    %c0_i32_0 = arith.constant 0 : i32
    %c0_i32_1 = arith.constant 0 : i32
    return %c0_i32, %c0_i32_0 : i32, i32
  }
  func.func @transform_5(%arg0: i32) -> (i32, i32) {
    %c0_i32 = arith.constant 0 : i32
    %c0_i32_0 = arith.constant 0 : i32
    %c0_i32_1 = arith.constant 0 : i32
    return %c0_i32, %c0_i32_0 : i32, i32
  }
  func.func @transform_6(%arg0: i32) -> (i32, i32) {
    %c0_i32 = arith.constant 0 : i32
    %c0_i32_0 = arith.constant 0 : i32
    %c0_i32_1 = arith.constant 0 : i32
    return %c0_i32, %c0_i32_0 : i32, i32
  }
  func.func @transform_7(%arg0: i32) -> (i32, i32) {
    %c0_i32 = arith.constant 0 : i32
    %c0_i32_0 = arith.constant 0 : i32
    return %arg0, %c0_i32 : i32, i32
  }
}

</mosaic_0001>

<bundles_post_ra>
// kernel: tpu_custom_call.1
= control target key start
LH: loop header
LB: loop body
LE: loop exit
PB: predicated region body
PF: predicated region fallthrough
CT: control target
= control target key end

     0   :  { %s5452_s0 = inlined_call_operand.hbm [shape: f32[200,784], index: 0, kind: input, shape index: {}]   ;;  %s5453_s1 = inlined_call_operand.hbm [shape: bf16[784,512], index: 1, kind: input, shape index: {}]   ;;  %s5454_s2 = inlined_call_operand.vmem [shape: f32[1,512], index: 2, kind: input, shape index: {}]   ;;  %s5455_s3 = inlined_call_operand.hbm [shape: bf16[512,128], index: 3, kind: input, shape index: {}]   ;;  %s5456_s4 = inlined_call_operand.vmem [shape: f32[1,128], index: 4, kind: input, shape index: {}]   ;;  %s5457_s5 = inlined_call_operand.hbm [shape: bf16[128,128], index: 5, kind: input, shape index: {}]   ;;  %s5458_s6 = inlined_call_operand.vmem [shape: f32[1,128], index: 6, kind: input, shape index: {}]   ;;  %s5459_s7 = inlined_call_operand.hbm [shape: bf16[200,128], index: 7, kind: output, shape index: {}]  }
   0x1   :  { %5467 = sst [smem:[#allocation19_spill]] %s5453_s1 }
   0x2   :  { %12 = vsyncpa [#allocation3], 0 }
   0x3   :  { %14 = vsyncpa [#allocation3 + $0x1], 0 }
   0x4   :  { %15 = vsyncpa [#allocation6], 0 }
   0x5   :  { %16 = vsyncpa [#allocation9], 0 }
   0x6   :  { %17 = vsyncpa [#allocation4], 0 }
   0x7   :  { %19 = vsyncpa [#allocation4 + $0x1], 0  ;;  %s4808_s24 = smov 0   ;;  %s4810_s25 = smov 0  }
   0x8   :  { %s4812_s26 = smov 0   ;;  %s4814_s27 = smov 0  }
   0x9 LB: > { %5468 = sst [smem:[#allocation15_spill]] %s4738_s24  ;;  %s4829_s28 = sadd.s32 4294967295, %s4750_s27   ;;  %s4750_s27 = sphi %s4814_s27, %s5491_s27   ;;  %s4746_s26 = sphi %s4812_s26, %s5495_s26   ;;  %s4742_s25 = sphi %s4810_s25, %s5494_s25   ;;  %s4738_s24 = sphi %s4808_s24, %s5493_s24  }
   0xa   : > { %s3415_s29 = sadd.s32 4294967294, %s4750_s27   ;;  %s4833_s30 = sadd.s32 1, %s4750_s27  }
   0xb   : > { %5469 = sst [smem:[#allocation16_spill]] %s4833_s30  ;;  %s32_s8 = sadd.s32 1, %s4746_s26 }
   0xc   : > { %s29_s9 = ssub.s32 %s4750_s27, %s4833_s30  ;;  %p39_p0 = scmp.ne.s32.totalorder %s4746_s26, %s4742_s25 }
   0xd   : > { %p30_p1 = scmp.eq.s32.totalorder %s29_s9, 0  ;;  %p40_p2 = scmp.eq.s32.totalorder %s4750_s27, 0 }
   0xe   : > { %p45_p3 = scmp.ne.s32.totalorder %s4742_s25, %s4738_s24  ;;  %p5460_p4 = scmp.eq.s32.totalorder %s4829_s28, 0 }
   0xf   : > { %s4845_s10 = scalar_select %p30_p1, %s4746_s26, %s32_s8  }
  0x10   : > { %p4847_p5 = por %p40_p2, %p39_p0  ;;  %p4853_p6 = por %p5460_p4, %p45_p3 }
  0x11   : > { %5470 = sst [smem:[#allocation17_spill]] %s4845_s10  ;;  %p195_p7 = scmp.eq.s32.totalorder %s4829_s28, 1 }
  0x12   : > { %s5471_s11 = scalar_select %p4847_p5, 1, 0 }
  0x13   : > { %s5472_s12 = scalar_select %p4853_p6, 1, 0 }
  0x14   : > { %p201_p8 = scmp.eq.s32.totalorder %s3415_s29, 1  ;;  %p3416_p9 = scmp.ge.s32.totalorder %s4750_s27, 1 }
  0x15   : > { %p208_p10 = scmp.lt.s32.totalorder %s4750_s27, 3  ;;  %p4860_p11 = por %p195_p7, %p39_p0 }
  0x16   : > { %p4864_p12 = por %p201_p8, %p45_p3  ;;  %s4752_s16 = smov [#allocation5]  }
  0x17   : > { %s5473_s13 = scalar_select %p4860_p11, 1, 0 }
  0x18   : > { %s5474_s14 = scalar_select %p4864_p12, 1, 0 }
  0x19   : > { %p4868_p13 = pnand %p3416_p9, %p208_p10  ;;  %s220_s17 = sshll.u32 %s4752_s16, 4  ;;  %s221_s17 = int_to_ptr.vmem [resolvable:$true] %s220_s17 }
  0x1a   : > { %5475 = sst [smem:[#allocation18_spill]] %s5474_s14  ;;  %s4753_s19 = smov [#allocation7]  }
  0x1b   : > { %s5476_s15 = scalar_select %p4868_p13, 1, 0 }
  0x1c   : > { %p4162_p1 = pneg %p4868_p13  ;;  %s236_s20 = sshll.u32 %s4753_s19, 4  ;;  %s4880_s20 = int_to_ptr.vmem [resolvable:$true] %s236_s20 }
  0x1d   : > { %s5478_s1 = sld [smem:[#allocation19_spill]] }
  0x1e   : > { %p4876_p2 = pnand %p4162_p1, %p5460_p4 }
  0x20   : > { %p4890_p3 = pneg %p4876_p2 }
  0x23   : > { %s4564_s23 = scalar_lea.hbm %s5478_s1, 25088 }
  0x24   : > { %p4565_p0 = scmp.ne.s32.totalorder %s5478_s1, %s4564_s23  ;;  %p4571_p9 = scmp.lt.u32.totalorder %s4564_s23, %s5478_s1 }
  0x26   : > { %p4567_p7 = pnand %p4890_p3, %p4565_p0 }
  0x28   : > { %p4568_p8 = pneg %p4567_p7 }
  0x2a   : > { %p4573_p10 = pnand %p4571_p9, %p4568_p8 }
  0x2c   : > { %4576 = shalt.err (!%p4573_p10)
}
  0x2d   : > { %s4577_s21 = scalar_lea.vmem %s221_s17, 25088  ;;  %p4585_p11 = scmp.lt.s32.totalorder %s221_s17, %s221_s17 }
  0x2e   : > { %p4578_p1 = scmp.ne.s32.totalorder %s221_s17, %s4577_s21  ;;  %p4586_p6 = scmp.lt.s32.totalorder %s4577_s21, %s4577_s21 }
  0x30   : > { %p4580_p4 = pnand %p4578_p1, %p4890_p3  ;;  %p4587_p13 = por %p4586_p6, %p4585_p11 }
  0x32   : > { %p4581_p12 = pneg %p4580_p4 }
  0x34   : > { %p4588_p5 = pnand %p4587_p13, %p4581_p12 }
  0x36   : > { %4591 = shalt.err (!%p4588_p5)
}
  0x37   : > { %s4754_s22 = smov 256   ;;  %s4755_s29 = smov 16  }
  0x38   : > { %4165 = dma.hbm_to_vmem [thread:$0]  (!%p4876_p2), %s5478_s1, 25088, %s221_s17, [#allocation6], %s4754_s22, %s4754_s22, %s4755_s29  }
  0x39   : > { %s4592_s10 = scalar_lea.hbm %s5455_s3, 4096 }
  0x3a   : > { %p4593_p4 = scmp.ne.s32.totalorder %s5455_s3, %s4592_s10  ;;  %p4599_p11 = scmp.lt.u32.totalorder %s4592_s10, %s5455_s3 }
  0x3c   : > { %p4595_p6 = pnand %p4593_p4, %p4890_p3 }
  0x3e   : > { %p4596_p5 = pneg %p4595_p6 }
  0x40   : > { %p4601_p12 = pnand %p4599_p11, %p4596_p5 }
  0x42   : > { %4604 = shalt.err (!%p4601_p12)
}
  0x43   : > { %s4605_s17 = scalar_lea.vmem %s4880_s20, 4096  ;;  %p4613_p8 = scmp.lt.s32.totalorder %s4880_s20, %s4880_s20 }
  0x44   : > { %p4606_p13 = scmp.ne.s32.totalorder %s4880_s20, %s4605_s17  ;;  %p4614_p9 = scmp.lt.s32.totalorder %s4605_s17, %s4605_s17 }
  0x46   : > { %p4608_p0 = pnand %p4606_p13, %p4890_p3  ;;  %p4615_p10 = por %p4614_p9, %p4613_p8 }
  0x48   : > { %p4609_p7 = pneg %p4608_p0 }
  0x4a   : > { %p4616_p1 = pnand %p4615_p10, %p4609_p7 }
  0x4c   : > { %4619 = shalt.err (!%p4616_p1)
}
  0x4d   : > { %s4756_s30 = smov 64   ;;  %s4757_s24 = smov 4  }
  0x4e   : > { %4168 = dma.hbm_to_vmem [thread:$0]  (!%p4876_p2), %s5455_s3, 4096, %s4880_s20, [#allocation6], %s4756_s30, %s4756_s30, %s4757_s24  }
  0x4f   : > { %s4758_s22 = smov [#allocation8]   ;;  %s4620_s16 = scalar_lea.hbm %s5457_s5, 1024 }
  0x50   : > { %s252_s29 = sshll.u32 %s4758_s22, 4  ;;  %p4621_p4 = scmp.ne.s32.totalorder %s5457_s5, %s4620_s16  ;;  %s253_s29 = int_to_ptr.vmem [resolvable:$true] %s252_s29 }
  0x51   : > { %p4627_p11 = scmp.lt.u32.totalorder %s4620_s16, %s5457_s5 }
  0x52   : > { %p4623_p6 = pnand %p4621_p4, %p4890_p3 }
  0x54   : > { %p4624_p5 = pneg %p4623_p6 }
  0x56   : > { %p4629_p12 = pnand %p4627_p11, %p4624_p5 }
  0x58   : > { %4632 = shalt.err (!%p4629_p12)
}
  0x59   : > { %s4633_s20 = scalar_lea.vmem %s253_s29, 1024  ;;  %p4641_p8 = scmp.lt.s32.totalorder %s253_s29, %s253_s29 }
  0x5a   : > { %p4634_p13 = scmp.ne.s32.totalorder %s253_s29, %s4633_s20  ;;  %p4642_p9 = scmp.lt.s32.totalorder %s4633_s20, %s4633_s20 }
  0x5c   : > { %p4636_p0 = pnand %p4634_p13, %p4890_p3  ;;  %p4643_p10 = por %p4642_p9, %p4641_p8 }
  0x5e   : > { %p4637_p7 = pneg %p4636_p0 }
  0x60   : > { %p4644_p1 = pnand %p4643_p10, %p4637_p7 }
  0x62   : > { %4647 = shalt.err (!%p4644_p1)
}
  0x63   : > { %4171 = dma.hbm_to_vmem [thread:$0]  (!%p4876_p2), %s5457_s5, 1024, %s253_s29, [#allocation9], %s4756_s30, %s4756_s30, %s4757_s24  }
  0x64   : > { %p3420_p4 = scmp.ge.s32.totalorder %s4750_s27, 2 }
  0x65   : > { %p5480_p6 = scmp.ne.s32.totalorder (!%p3420_p4), %s5471_s11, 0 }
  0x66   : > { %265 = sbr.rel (%p3420_p4) target bundleno = 145 (0x91), region = 40 }
  0x6d   : > { %268 = sbr.rel (!%p5480_p6) target bundleno = 145 (0x91), region = 44  ;;  %s269_s1 = sand.u32 (%p5480_p6), 1, %s4746_s26  }
  0x6e   : > { %s274_s9 = smul.u32 (%p5480_p6), 13, %s4750_s27  ;;  %s4957_s24 = scalar_lea.sflag (%p5480_p6), [#allocation3], %s269_s1 }
  0x6f   : > { %s4144_s22 = smul.u32 (%p5480_p6), 728, %s269_s1 }
  0x70   : > { %s275_s8 = ssub.s32 (%p5480_p6), 25, %s274_s9 }
  0x71   : > { %p276_p3 = scmp.lt.s32.totalorder (%p5480_p6), %s275_s8, 13  ;;  %s273_s29 = scalar_lea.vmem (%p5480_p6), [#allocation2], %s4144_s22 }
  0x74   : > { %s5497_s8 = smov (!%p276_p3, %s275_s8), 13 }
  0x75   : > { %s4954_s18 = smul.u32 896, %s5497_s8 }
  0x77   : > { %s281_s30 = ssub.s32 11648, %s4954_s18 }
  0x78   : > { %282 = vsyncadd %s4957_s24, %s281_s30  ;;  %p3423_p2 = scmp.ne.s32.totalorder %s4954_s18, 0  ;;  %s4179_s11 = smul.u32 11648, %s4750_s27 }
  0x79   : > { %s288_s23 = sshll.u32 %s273_s29, 4  ;;  %s4652_s14 = scalar_lea.hbm %s5452_s0, 22400  ;;  %s4967_s23 = int_to_ptr.vmem [resolvable:$true] %s288_s23 }
  0x7a   : > { %s4965_s21 = scalar_lea.hbm %s5452_s0, %s4179_s11 }
  0x7b   : > { %s4648_s17 = scalar_lea.hbm %s4965_s21, %s4954_s18  ;;  %p4653_p13 = scmp.lt.u32.totalorder %s4965_s21, %s5452_s0 }
  0x7c   : > { %p4649_p5 = scmp.ne.s32.totalorder %s4965_s21, %s4648_s17  ;;  %p4654_p0 = scmp.lt.u32.totalorder %s4652_s14, %s4648_s17 }
  0x7d   : > { %p4656_p8 = scmp.lt.u32.totalorder %s4648_s17, %s4965_s21 }
  0x7e   : > { %p4650_p11 = pnand %p4649_p5, %p3423_p2  ;;  %p4655_p7 = por %p4654_p0, %p4653_p13 }
  0x80   : > { %p4651_p12 = pneg %p4650_p11  ;;  %p4657_p9 = por %p4656_p8, %p4655_p7 }
  0x82   : > { %p4658_p10 = pnand %p4657_p9, %p4651_p12 }
  0x84   : > { %4661 = shalt.err (!%p4658_p10)
}
  0x85   : > { %s4662_s22 = scalar_lea.vmem %s4967_s23, %s4954_s18  ;;  %s4759_s8 = smov [#allocation2]  }
  0x86   : > { %p4663_p1 = scmp.ne.s32.totalorder %s4967_s23, %s4662_s22  ;;  %s4666_s30 = sshll.u32 %s4759_s8, 4  ;;  %s4667_s30 = int_to_ptr.vmem [resolvable:$false] %s4666_s30 }
  0x87   : > { %s4668_s29 = scalar_lea.vmem %s4667_s30, 23296  ;;  %p4669_p5 = scmp.lt.s32.totalorder %s4967_s23, %s4667_s30 }
  0x88   : > { %p4664_p6 = pnand %p4663_p1, %p3423_p2  ;;  %p4670_p11 = scmp.lt.s32.totalorder %s4668_s29, %s4662_s22 }
  0x8a   : > { %p4665_p3 = pneg %p4664_p6  ;;  %p4671_p13 = por %p4670_p11, %p4669_p5 }
  0x8c   : > { %p4672_p0 = pnand %p4671_p13, %p4665_p3 }
  0x8e   : > { %4675 = shalt.err (!%p4672_p0)
}
  0x8f   : > { %s4760_s11 = smov 896   ;;  %s4761_s16 = smov 56  }
  0x90   : > { %294 = dma.hbm_to_vmem [thread:$0]  (%p3423_p2), %s4965_s21, %s4954_s18, %s4967_s23, %s4957_s24, %s4760_s11, %s4760_s11, %s4761_s16  }
  0x91 PF: > { %p5481_p12 = scmp.ne.s32.totalorder %s5476_s15, 0 }
  0x92   : > { %s4997_s19 = sand.u32 (!%p5481_p12), 1, %s4742_s25   ;;  %p5482_p7 = scmp.ne.s32.totalorder (!%p5481_p12), %s5472_s12, 0 }
  0x93   : > { %300 = sbr.rel (%p5481_p12) target bundleno = 1153 (0x481), region = 48  ;;  %s303_s20 = scalar_lea.sflag (!%p5481_p12), [#allocation3], %s4997_s19 }
  0x94   : > { %s4146_s17 = smul.u32 (!%p5481_p12), 728, %s4997_s19 }
  0x96   : > { %s5001_s10 = scalar_lea.vmem (!%p5481_p12), [#allocation2], %s4146_s17 }
  0x9a   : > { %4721 = dma.done.wait (%p5482_p7), %s303_s20, 11648  }
  0x9b   : > { %4723 = vsyncadd (%p5482_p7), %s303_s20, 4294955648  ;;  %p5483_p2 = scmp.eq.s32.totalorder %s4829_s28, 0 }
  0x9d   : > { %4725 = dma.done.wait (%p5483_p2), [#allocation6], 29184   ;;  %p5484_p8 = pmov %p5483_p2 }
  0x9e   : > { %p5485_p9 = pmov %p5483_p2 }
  0x9f   : > { %4727 = vsyncadd (%p5484_p8), [#allocation6], 4294938112 }
  0xa0   : > { %4729 = dma.done.wait (%p5485_p9), [#allocation9], 1024   ;;  %p5486_p10 = pmov %p5483_p2 }
  0xa1   : > { %v4762_v0 = vmov 0   ;;  %v4230_v1 = vld [vmem:[#allocation5 + $0x4] ss:$16 sps:$4 sm:$0xff]   ;;  %v4234_v3 = vld [vmem:[#allocation5] ss:$16 sps:$4 sm:$0xff]   ;;  %vm1699_vm0 = vcmask 130048  }
  0xa2   : > { %4731 = vsyncadd (%p5486_p10), [#allocation9], 4294966272  ;;  %2056 = vmatprep.mubr.bf16.mxu1 %v4762_v0  ;;  %v4232_v2 = vld [vmem:[#allocation5 + $0x604] ss:$16 sps:$4 sm:$0xff]   ;;  %1721 = vmatprep.subr.bf16.mxu0 %v4230_v1  ;;  %v4235_v4 = vld [vmem:[#allocation5 + $0x600] ss:$16 sps:$4 sm:$0xff]  }
  0xa3   : > { %2024 = vmatprep.subr.bf16.mxu1 %v4232_v2  ;;  %v4236_v5 = vld [vmem:[#allocation5 + $0x24] ss:$16 sps:$4 sm:$0xff]   ;;  %1722 = vmatpush1.bf16.msra.mxu0 %v4234_v3  ;;  %v4238_v9 = vld [vmem:[#allocation5 + $0x8] ss:$16 sps:$4 sm:$0xff]   ;;  %v4240_v10 = vld [vmem:[#allocation5 + $0xc] ss:$16 sps:$4 sm:$0xff]  }
  0xa4   : > { %v367_v6 = vld [vmem:[%s5001_s10 + $0x30] sm:$0xff]  ;;  %2025 = vmatpush1.bf16.msra.mxu1 %v4235_v4  ;;  %v374_v7 = vld [vmem:[%s5001_s10 + $0x68] sm:$0xff]  ;;  %1723 = vmatprep.subr.bf16.mxu0 %v4236_v5  ;;  %v381_v22 = vld [vmem:[%s5001_s10 + $0xa0] sm:$0xff]  ;;  %vm4764_vm1 = vmmov 0   ;;  %s4147_s14 = smul.u32 52, %s4997_s19  ;;  %s3294_s9 = scalar_lea.sflag [#allocation4], %s4997_s19 }
  0xa5   : > { %v5018_v8 = vpack.c.bf16 %v374_v7, %v367_v6  ;;  %v4241_v11 = vld [vmem:[#allocation5 + $0x20] ss:$16 sps:$4 sm:$0xff]   ;;  %v4242_v12 = vld [vmem:[#allocation5 + $0x44] ss:$16 sps:$4 sm:$0xff]   ;;  %2125 = vmatprep.subr.bf16.mxu1 %v4240_v10  ;;  %v4244_v13 = vld [vmem:[#allocation5 + $0x28] ss:$16 sps:$4 sm:$0xff]  }
  0xa6   : > { %v4246_v14 = vld [vmem:[#allocation5 + $0x2c] ss:$16 sps:$4 sm:$0xff]   ;;  %v4247_v15 = vld [vmem:[#allocation5 + $0x40] ss:$16 sps:$4 sm:$0xff]   ;;  %v4248_v16 = vld [vmem:[#allocation5 + $0x64] ss:$16 sps:$4 sm:$0xff]  }
  0xa7   : > { %3626 = vmatmul.mubr.msk.bf16.vlgmr.msra.gmra.mrb[0].mxu1 %vm1699_vm0, %v5018_v8  ;;  %1724 = vmatpush1.bf16.msra.mxu0 %v4241_v11  ;;  %v4252_v17 = vld [vmem:[#allocation5 + $0x4c] ss:$16 sps:$4 sm:$0xff]   ;;  %v4250_v18 = vld [vmem:[#allocation5 + $0x48] ss:$16 sps:$4 sm:$0xff]   ;;  %v4253_v19 = vld [vmem:[#allocation5 + $0x60] ss:$16 sps:$4 sm:$0xff]  }
  0xa8   : > { %2126 = vmatpush1.bf16.msra.mxu1 %v4238_v9  ;;  %1725 = vmatprep.subr.bf16.mxu0 %v4242_v12  ;;  %v4254_v20 = vld [vmem:[#allocation5 + $0x84] ss:$16 sps:$4 sm:$0xff]   ;;  %v4258_v21 = vld [vmem:[#allocation5 + $0x6c] ss:$16 sps:$4 sm:$0xff]   ;;  %v4256_v24 = vld [vmem:[#allocation5 + $0x68] ss:$16 sps:$4 sm:$0xff]  }
  0xa9   : > { %2066 = vmatprep.mubr.bf16.mxu1 %v4762_v0  ;;  %2127 = vmatprep.subr.bf16.mxu1 %v4246_v14  ;;  %v388_v23 = vld [vmem:[%s5001_s10 + $0xd8] sm:$0xff]  ;;  %v395_v32 = vld [vmem:[%s5001_s10 + $0x110] sm:$0xff]  ;;  %v402_v33 = vld [vmem:[%s5001_s10 + $0x148] sm:$0xff]  ;;  %s5380_s1 = scalar_lea.vmem [#allocation10], %s4147_s14  ;;  %p5487_p1 = scmp.ne.s32.totalorder %s5473_s13, 0 }
  0xaa   : > { %v5025_v25 = vpack.c.bf16 %v388_v23, %v381_v22  ;;  %v4259_v26 = vld [vmem:[#allocation5 + $0x80] ss:$16 sps:$4 sm:$0xff]   ;;  %v4260_v27 = vld [vmem:[#allocation5 + $0xa4] ss:$16 sps:$4 sm:$0xff]   ;;  %v4264_v28 = vld [vmem:[#allocation5 + $0x8c] ss:$16 sps:$4 sm:$0xff]   ;;  %v5032_v35 = vpack.c.bf16 %v402_v33, %v395_v32 }
  0xab   : > { %1726 = vmatpush1.bf16.msra.mxu0 %v4247_v15  ;;  %v4262_v29 = vld [vmem:[#allocation5 + $0x88] ss:$16 sps:$4 sm:$0xff]   ;;  %v4265_v30 = vld [vmem:[#allocation5 + $0xa0] ss:$16 sps:$4 sm:$0xff]   ;;  %v4266_v31 = vld [vmem:[#allocation5 + $0xc4] ss:$16 sps:$4 sm:$0xff]  }
  0xac   : > { %2128 = vmatpush1.bf16.msra.mxu1 %v4244_v13  ;;  %1727 = vmatprep.subr.bf16.mxu0 %v4248_v16  ;;  %v4270_v34 = vld [vmem:[#allocation5 + $0xac] ss:$16 sps:$4 sm:$0xff]   ;;  %v4268_v36 = vld [vmem:[#allocation5 + $0xa8] ss:$16 sps:$4 sm:$0xff]   ;;  %v4271_v37 = vld [vmem:[#allocation5 + $0xc0] ss:$16 sps:$4 sm:$0xff]  }
  0xad   : > { %2129 = vmatprep.subr.bf16.mxu1 %v4252_v17  ;;  %v4272_v38 = vld [vmem:[#allocation5 + $0xe4] ss:$16 sps:$4 sm:$0xff]   ;;  %v4276_v39 = vld [vmem:[#allocation5 + $0xcc] ss:$16 sps:$4 sm:$0xff]   ;;  %v4274_v40 = vld [vmem:[#allocation5 + $0xc8] ss:$16 sps:$4 sm:$0xff]  }
  0xae   : > { %v409_v41 = vld [vmem:[%s5001_s10 + $0x180] sm:$0xff]  ;;  %v416_v42 = vld [vmem:[%s5001_s10 + $0x1b8] sm:$0xff]  ;;  %v423_v52 = vld [vmem:[%s5001_s10 + $0x1f0] sm:$0xff]  ;;  %s3301_s22 = smul.u32 (%p5487_p1), 13, %s4829_s28 }
  0xaf   : > { %1728 = vmatpush1.bf16.msra.mxu0 %v4253_v19  ;;  %3627 = vmatmul.mubr.msk.bf16.gmra.mrb[4].mxu1 %vm1699_vm0, %v5025_v25  ;;  %v4277_v43 = vld [vmem:[#allocation5 + $0xe0] ss:$16 sps:$4 sm:$0xff]   ;;  %v4278_v44 = vld [vmem:[#allocation5 + $0x104] ss:$16 sps:$4 sm:$0xff]   ;;  %v4282_v45 = vld [vmem:[#allocation5 + $0xec] ss:$16 sps:$4 sm:$0xff]   ;;  %v5039_v46 = vpack.c.bf16 %v416_v42, %v409_v41 }
  0xb0   : > { %2130 = vmatpush1.bf16.msra.mxu1 %v4250_v18  ;;  %1729 = vmatprep.subr.bf16.mxu0 %v4254_v20  ;;  %v4280_v47 = vld [vmem:[#allocation5 + $0xe8] ss:$16 sps:$4 sm:$0xff]   ;;  %v4283_v48 = vld [vmem:[#allocation5 + $0x100] ss:$16 sps:$4 sm:$0xff]   ;;  %v4284_v49 = vld [vmem:[#allocation5 + $0x124] ss:$16 sps:$4 sm:$0xff]  }
  0xb1   : > { %2131 = vmatprep.subr.bf16.mxu1 %v4258_v21  ;;  %2076 = vmatprep.mubr.bf16.mxu1 %v4762_v0  ;;  %v4288_v50 = vld [vmem:[#allocation5 + $0x10c] ss:$16 sps:$4 sm:$0xff]   ;;  %v4286_v51 = vld [vmem:[#allocation5 + $0x108] ss:$16 sps:$4 sm:$0xff]   ;;  %v4289_v54 = vld [vmem:[#allocation5 + $0x120] ss:$16 sps:$4 sm:$0xff]  }
  0xb2   : > { %v430_v53 = vld [vmem:[%s5001_s10 + $0x228] sm:$0xff]  ;;  %v437_v1 = vld [vmem:[%s5001_s10 + $0x260] sm:$0xff]  ;;  %v444_v2 = vld [vmem:[%s5001_s10 + $0x298] sm:$0xff]  ;;  %s3302_s8 = ssub.s32 (%p5487_p1), 25, %s3301_s22 }
  0xb3   : > { %1730 = vmatpush1.bf16.msra.mxu0 %v4259_v26  ;;  %v4290_v55 = vld [vmem:[#allocation5 + $0x144] ss:$16 sps:$4 sm:$0xff]   ;;  %v4294_v56 = vld [vmem:[#allocation5 + $0x12c] ss:$16 sps:$4 sm:$0xff]   ;;  %v5046_v57 = vpack.c.bf16 %v430_v53, %v423_v52  ;;  %v4292_v58 = vld [vmem:[#allocation5 + $0x128] ss:$16 sps:$4 sm:$0xff]   ;;  %v5053_v6 = vpack.c.bf16 %v444_v2, %v437_v1 }
  0xb4   : > { %2132 = vmatpush1.bf16.msra.mxu1 %v4256_v24  ;;  %1731 = vmatprep.subr.bf16.mxu0 %v4260_v27  ;;  %v4295_v59 = vld [vmem:[#allocation5 + $0x140] ss:$16 sps:$4 sm:$0xff]   ;;  %v4296_v60 = vld [vmem:[#allocation5 + $0x164] ss:$16 sps:$4 sm:$0xff]   ;;  %v4300_v61 = vld [vmem:[#allocation5 + $0x14c] ss:$16 sps:$4 sm:$0xff]  }
  0xb5   : > { %2133 = vmatprep.subr.bf16.mxu1 %v4264_v28  ;;  %v4298_v62 = vld [vmem:[#allocation5 + $0x148] ss:$16 sps:$4 sm:$0xff]   ;;  %v4301_v63 = vld [vmem:[#allocation5 + $0x160] ss:$16 sps:$4 sm:$0xff]   ;;  %v4302_v3 = vld [vmem:[#allocation5 + $0x184] ss:$16 sps:$4 sm:$0xff]  }
  0xb6   : > { %v4306_v4 = vld [vmem:[#allocation5 + $0x16c] ss:$16 sps:$4 sm:$0xff]   ;;  %v4304_v5 = vld [vmem:[#allocation5 + $0x168] ss:$16 sps:$4 sm:$0xff]   ;;  %v4307_v10 = vld [vmem:[#allocation5 + $0x180] ss:$16 sps:$4 sm:$0xff]  }
  0xb7   : > { %1732 = vmatpush1.bf16.msra.mxu0 %v4265_v30  ;;  %3628 = vmatmul.mubr.msk.bf16.gmra.mrb[8].mxu1 %vm1699_vm0, %v5032_v35  ;;  %v362_v7 = vld [vmem:[%s5001_s10 + $0x8] sm:$0xff]  ;;  %v369_v9 = vld [vmem:[%s5001_s10 + $0x40] sm:$0xff]  ;;  %v451_v15 = vld [vmem:[%s5001_s10 + $0x2d0] sm:$0xff]  ;;  %p3303_p6 = scmp.lt.s32.totalorder (%p5487_p1), %s3302_s8, 13 }
  0xb8   : > { %2134 = vmatpush1.bf16.msra.mxu1 %v4262_v29  ;;  %1733 = vmatprep.subr.bf16.mxu0 %v4266_v31  ;;  %v4308_v11 = vld [vmem:[#allocation5 + $0x1a4] ss:$16 sps:$4 sm:$0xff]   ;;  %v453_v12 = vpack.c.bf16 %v369_v9, %v362_v7  ;;  %v4312_v13 = vld [vmem:[#allocation5 + $0x18c] ss:$16 sps:$4 sm:$0xff]   ;;  %v4310_v14 = vld [vmem:[#allocation5 + $0x188] ss:$16 sps:$4 sm:$0xff]   ;;  %v5061_v19 = vpack.c.bf16 %v451_v15, %v451_v15 }
  0xb9   : > { %2135 = vmatprep.subr.bf16.mxu1 %v4270_v34  ;;  %2086 = vmatprep.mubr.bf16.mxu1 %v4762_v0  ;;  %v4313_v16 = vld [vmem:[#allocation5 + $0x1a0] ss:$16 sps:$4 sm:$0xff]   ;;  %v4314_v17 = vld [vmem:[#allocation5 + $0x1c4] ss:$16 sps:$4 sm:$0xff]   ;;  %v4318_v18 = vld [vmem:[#allocation5 + $0x1ac] ss:$16 sps:$4 sm:$0xff]  }
  0xba   : > { %1753 = vmatprep.mubr.bf16.mxu0 %v453_v12  ;;  %v4316_v20 = vld [vmem:[#allocation5 + $0x1a8] ss:$16 sps:$4 sm:$0xff]   ;;  %v4319_v21 = vld [vmem:[#allocation5 + $0x1c0] ss:$16 sps:$4 sm:$0xff]   ;;  %v4320_v22 = vld [vmem:[#allocation5 + $0x1e4] ss:$16 sps:$4 sm:$0xff]  }
  0xbb   : > { %1734 = vmatpush1.bf16.msra.mxu0 %v4271_v37  ;;  %v4324_v23 = vld [vmem:[#allocation5 + $0x1cc] ss:$16 sps:$4 sm:$0xff]   ;;  %v4322_v24 = vld [vmem:[#allocation5 + $0x1c8] ss:$16 sps:$4 sm:$0xff]   ;;  %v4325_v26 = vld [vmem:[#allocation5 + $0x1e0] ss:$16 sps:$4 sm:$0xff]  }
  0xbc   : > { %2136 = vmatpush1.bf16.msra.mxu1 %v4268_v36  ;;  %1735 = vmatprep.subr.bf16.mxu0 %v4272_v38  ;;  %v4328_v27 = vld [vmem:[#allocation5 + $0x204] ss:$16 sps:$4 sm:$0xff]   ;;  %v4331_v30 = vld [vmem:[#allocation5 + $0x1ec] ss:$16 sps:$4 sm:$0xff]   ;;  %v4326_v31 = vld [vmem:[#allocation5 + $0x200] ss:$16 sps:$4 sm:$0xff]  }
  0xbd   : > { %2137 = vmatprep.subr.bf16.mxu1 %v4276_v39  ;;  %v361_v28 = vld [vmem:[%s5001_s10] sm:$0xff]  ;;  %v368_v29 = vld [vmem:[%s5001_s10 + $0x38] sm:$0xff]  ;;  %v383_v34 = vld [vmem:[%s5001_s10 + $0xb0] sm:$0xff] }
  0xbe   : > { %v376_v32 = vld [vmem:[%s5001_s10 + $0x78] sm:$0xff]  ;;  %v452_v33 = vpack.c.bf16 %v368_v29, %v361_v28  ;;  %v375_v42 = vld [vmem:[%s5001_s10 + $0x70] sm:$0xff] }
  0xbf   : > { %1736 = vmatpush1.bf16.msra.mxu0 %v4277_v43  ;;  %3629 = vmatmul.mubr.msk.bf16.gmra.mrb[12].mxu1 %vm1699_vm0, %v5039_v46  ;;  %v4329_v36 = vld [vmem:[#allocation5 + $0x1e8] ss:$16 sps:$4 sm:$0xff]   ;;  %v4334_v37 = vld [vmem:[#allocation5 + $0x224] ss:$16 sps:$4 sm:$0xff]   ;;  %v4337_v38 = vld [vmem:[#allocation5 + $0x20c] ss:$16 sps:$4 sm:$0xff]   ;;  %v460_v39 = vpack.c.bf16 %v383_v34, %v376_v32 }
  0xc0   : > { %2138 = vmatpush1.bf16.msra.mxu1 %v4274_v40  ;;  %1737 = vmatprep.subr.bf16.mxu0 %v4278_v44  ;;  %v4332_v40 = vld [vmem:[#allocation5 + $0x220] ss:$16 sps:$4 sm:$0xff]   ;;  %v4335_v41 = vld [vmem:[#allocation5 + $0x208] ss:$16 sps:$4 sm:$0xff]   ;;  %v4340_v44 = vld [vmem:[#allocation5 + $0x244] ss:$16 sps:$4 sm:$0xff]  }
  0xc1   : > { %2139 = vmatprep.subr.bf16.mxu1 %v4282_v45  ;;  %2096 = vmatprep.mubr.bf16.mxu1 %v4762_v0  ;;  %v382_v43 = vld [vmem:[%s5001_s10 + $0xa8] sm:$0xff]  ;;  %v404_v1 = vld [vmem:[%s5001_s10 + $0x158] sm:$0xff]  ;;  %v411_v2 = vld [vmem:[%s5001_s10 + $0x190] sm:$0xff] }
  0xc2   : > { %v4343_v45 = vld [vmem:[#allocation5 + $0x22c] ss:$16 sps:$4 sm:$0xff]   ;;  %v4346_v52 = vld [vmem:[#allocation5 + $0x264] ss:$16 sps:$4 sm:$0xff]   ;;  %v4356_v7 = vld [vmem:[#allocation5 + $0x2a0] ss:$16 sps:$4 sm:$0xff]  }
  0xc3   : > { %1738 = vmatpush1.bf16.msra.mxu0 %v4283_v48  ;;  %v459_v48 = vpack.c.bf16 %v382_v43, %v375_v42  ;;  %v4349_v53 = vld [vmem:[#allocation5 + $0x24c] ss:$16 sps:$4 sm:$0xff]   ;;  %v4359_v9 = vld [vmem:[#allocation5 + $0x288] ss:$16 sps:$4 sm:$0xff]   ;;  %v4376_v29 = vld [vmem:[#allocation5 + $0x304] ss:$16 sps:$4 sm:$0xff]  }
  0xc4   : > { %2140 = vmatpush1.bf16.msra.mxu1 %v4280_v47  ;;  %1739 = vmatprep.subr.bf16.mxu0 %v4284_v49  ;;  %v390_v47 = vld [vmem:[%s5001_s10 + $0xe8] sm:$0xff]  ;;  %v397_v49 = vld [vmem:[%s5001_s10 + $0x120] sm:$0xff]  ;;  %v424_v28 = vld [vmem:[%s5001_s10 + $0x1f8] sm:$0xff] }
  0xc5   : > { %2141 = vmatprep.subr.bf16.mxu1 %v4288_v50  ;;  %v4338_v50 = vld [vmem:[#allocation5 + $0x240] ss:$16 sps:$4 sm:$0xff]  }
  0xc6   : > { %v439_v34 = vld [vmem:[%s5001_s10 + $0x270] sm:$0xff]  ;;  %v438_v43 = vld [vmem:[%s5001_s10 + $0x268] sm:$0xff] }
  0xc7   : > { %1740 = vmatpush1.bf16.msra.mxu0 %v4289_v54  ;;  %3630 = vmatmul.mubr.msk.bf16.gmra.mrb[16].mxu1 %vm1699_vm0, %v5046_v57  ;;  %v467_v54 = vpack.c.bf16 %v397_v49, %v390_v47  ;;  %v431_v42 = vld [vmem:[%s5001_s10 + $0x230] sm:$0xff]  ;;  %v446_v49 = vld [vmem:[%s5001_s10 + $0x2a8] sm:$0xff] }
  0xc8   : > { %2142 = vmatpush1.bf16.msra.mxu1 %v4286_v51  ;;  %1741 = vmatprep.subr.bf16.mxu0 %v4290_v55  ;;  %v4341_v51 = vld [vmem:[#allocation5 + $0x228] ss:$16 sps:$4 sm:$0xff]   ;;  %v4344_v55 = vld [vmem:[#allocation5 + $0x260] ss:$16 sps:$4 sm:$0xff]  }
  0xc9   : > { %2143 = vmatprep.subr.bf16.mxu1 %v4294_v56  ;;  %2106 = vmatprep.mubr.bf16.mxu1 %v4762_v0  ;;  %v4347_v56 = vld [vmem:[#allocation5 + $0x248] ss:$16 sps:$4 sm:$0xff]   ;;  %v4386_v47 = vld [vmem:[#allocation5 + $0x340] ss:$16 sps:$4 sm:$0xff]  }
  0xcb   : > { %1742 = vmatpush1.bf16.msra.mxu0 %v4295_v59  ;;  %v396_v59 = vld [vmem:[%s5001_s10 + $0x118] sm:$0xff] }
  0xcc   : > { %2144 = vmatpush1.bf16.msra.mxu1 %v4292_v58  ;;  %1743 = vmatprep.subr.bf16.mxu0 %v4296_v60  ;;  %v389_v58 = vld [vmem:[%s5001_s10 + $0xe0] sm:$0xff] }
  0xcd   : > { %2145 = vmatprep.subr.bf16.mxu1 %v4300_v61  ;;  %v4352_v60 = vld [vmem:[#allocation5 + $0x284] ss:$16 sps:$4 sm:$0xff]   ;;  %v4355_v61 = vld [vmem:[#allocation5 + $0x26c] ss:$16 sps:$4 sm:$0xff]  }
  0xcf   : > { %1744 = vmatpush1.bf16.msra.mxu0 %v4301_v63  ;;  %3631 = vmatmul.mubr.msk.bf16.gmra.mrb[20].mxu1 %vm1699_vm0, %v5053_v6  ;;  %v466_v63 = vpack.c.bf16 %v396_v59, %v389_v58  ;;  %v445_v58 = vld [vmem:[%s5001_s10 + $0x2a0] sm:$0xff] }
  0xd0   : > { %2146 = vmatpush1.bf16.msra.mxu1 %v4298_v62  ;;  %1745 = vmatprep.subr.bf16.mxu0 %v4302_v3  ;;  %v4350_v62 = vld [vmem:[#allocation5 + $0x280] ss:$16 sps:$4 sm:$0xff]   ;;  %v4353_v3 = vld [vmem:[#allocation5 + $0x268] ss:$16 sps:$4 sm:$0xff]   ;;  %v4403_v59 = vld [vmem:[#allocation5 + $0x36c] ss:$16 sps:$4 sm:$0xff]  }
  0xd1   : > { %2147 = vmatprep.subr.bf16.mxu1 %v4306_v4  ;;  %2116 = vmatprep.mubr.bf16.mxu1 %v4762_v0  ;;  %v4358_v4 = vld [vmem:[#allocation5 + $0x2a4] ss:$16 sps:$4 sm:$0xff]  }
  0xd3   : > { %1746 = vmatpush1.bf16.msra.mxu0 %v4307_v10  ;;  %v474_v10 = vpack.c.bf16 %v411_v2, %v404_v1  ;;  %v4401_v1 = vld [vmem:[#allocation5 + $0x368] ss:$16 sps:$4 sm:$0xff]   ;;  %v4406_v2 = vld [vmem:[#allocation5 + $0x3a4] ss:$16 sps:$4 sm:$0xff]  }
  0xd4   : > { %2148 = vmatpush1.bf16.msra.mxu1 %v4304_v5  ;;  %1747 = vmatprep.subr.bf16.mxu0 %v4308_v11  ;;  %v4361_v5 = vld [vmem:[#allocation5 + $0x28c] ss:$16 sps:$4 sm:$0xff]  }
  0xd5   : > { %2149 = vmatprep.subr.bf16.mxu1 %v4312_v13  ;;  %v403_v11 = vld [vmem:[%s5001_s10 + $0x150] sm:$0xff] }
  0xd6   : > { %v4364_v13 = vld [vmem:[#allocation5 + $0x2c4] ss:$16 sps:$4 sm:$0xff]  }
  0xd7   : > { %1748 = vmatpush1.bf16.msra.mxu0 %v4313_v16  ;;  %3632 = vmatmul.mubr.msk.bf16.gmra.mrb[24].mxu1 %vm1699_vm0, %v5061_v19  ;;  %v418_v16 = vld [vmem:[%s5001_s10 + $0x1c8] sm:$0xff] }
  0xd8   : > { %2150 = vmatpush1.bf16.msra.mxu1 %v4310_v14  ;;  %1749 = vmatprep.subr.bf16.mxu0 %v4314_v17  ;;  %v4367_v14 = vld [vmem:[#allocation5 + $0x2ac] ss:$16 sps:$4 sm:$0xff]  }
  0xd9   : > { %2151 = vmatprep.subr.bf16.mxu1 %v4318_v18  ;;  %2157 = vmatprep.mubr.bf16.mxu1 %v453_v12  ;;  %v410_v12 = vld [vmem:[%s5001_s10 + $0x188] sm:$0xff]  ;;  %v425_v17 = vld [vmem:[%s5001_s10 + $0x200] sm:$0xff] }
  0xda   : > { %v473_v15 = vpack.c.bf16 %v410_v12, %v403_v11  ;;  %v4362_v18 = vld [vmem:[#allocation5 + $0x2c0] ss:$16 sps:$4 sm:$0xff]   ;;  %v4413_v12 = vld [vmem:[#allocation5 + $0x3a8] ss:$16 sps:$4 sm:$0xff]  }
  0xdb   : > { %1750 = vmatpush1.bf16.msra.mxu0 %v4319_v21  ;;  %v4370_v21 = vld [vmem:[#allocation5 + $0x2e4] ss:$16 sps:$4 sm:$0xff]   ;;  %v4410_v11 = vld [vmem:[#allocation5 + $0x3c0] ss:$16 sps:$4 sm:$0xff]  }
  0xdc   : > { %2152 = vmatpush1.bf16.msra.mxu1 %v4316_v20  ;;  %1751 = vmatprep.subr.bf16.mxu0 %v4320_v22  ;;  %v4365_v20 = vld [vmem:[#allocation5 + $0x2a8] ss:$16 sps:$4 sm:$0xff]   ;;  %v4373_v22 = vld [vmem:[#allocation5 + $0x2cc] ss:$16 sps:$4 sm:$0xff]  }
  0xdd   : > { %2153 = vmatprep.subr.bf16.mxu1 %v4324_v23  ;;  %v4368_v23 = vld [vmem:[#allocation5 + $0x2e0] ss:$16 sps:$4 sm:$0xff]  }
  0xdf   : > { %1752 = vmatpush1.bf16.msra.mxu0 %v4325_v26  ;;  %v4371_v26 = vld [vmem:[#allocation5 + $0x2c8] ss:$16 sps:$4 sm:$0xff]  }
  0xe0   : > { %2154 = vmatpush1.bf16.msra.mxu1 %v4322_v24  ;;  %1822 = vmatprep.subr.bf16.mxu0 %v4328_v27  ;;  %v481_v24 = vpack.c.bf16 %v425_v17, %v418_v16  ;;  %v417_v27 = vld [vmem:[%s5001_s10 + $0x1c0] sm:$0xff] }
  0xe1   : > { %2155 = vmatprep.subr.bf16.mxu1 %v4331_v30  ;;  %v4379_v30 = vld [vmem:[#allocation5 + $0x2ec] ss:$16 sps:$4 sm:$0xff]   ;;  %v480_v32 = vpack.c.bf16 %v424_v28, %v417_v27  ;;  %v4419_v16 = vld [vmem:[#allocation5 + $0x3c8] ss:$16 sps:$4 sm:$0xff]   ;;  %v4424_v17 = vld [vmem:[#allocation5 + $0x404] ss:$16 sps:$4 sm:$0xff]  }
  0xe2   : > { %1754 = vmatmul.mubr.bf16.vlgmr.msra.gmra.mrb[0].mxu0 %v452_v33  ;;  %v4425_v27 = vld [vmem:[#allocation5 + $0x3e8] ss:$16 sps:$4 sm:$0xff]   ;;  %v4430_v28 = vld [vmem:[#allocation5 + $0x424] ss:$16 sps:$4 sm:$0xff]  }
  0xe3   : > { %1823 = vmatpush1.bf16.msra.mxu0 %v4326_v31  ;;  %1763 = vmatprep.mubr.bf16.mxu0 %v460_v39  ;;  %v4374_v31 = vld [vmem:[#allocation5 + $0x300] ss:$16 sps:$4 sm:$0xff]  }
  0xe4   : > { %2156 = vmatpush1.bf16.msra.mxu1 %v4329_v36  ;;  %1824 = vmatprep.subr.bf16.mxu0 %v4334_v37  ;;  %v4377_v36 = vld [vmem:[#allocation5 + $0x2e8] ss:$16 sps:$4 sm:$0xff]   ;;  %v4382_v37 = vld [vmem:[#allocation5 + $0x324] ss:$16 sps:$4 sm:$0xff]  }
  0xe5   : > { %2226 = vmatprep.subr.bf16.mxu1 %v4337_v38  ;;  %v4385_v38 = vld [vmem:[#allocation5 + $0x30c] ss:$16 sps:$4 sm:$0xff]  }
  0xe7   : > { %2158 = vmatmul.mubr.bf16.vlgmr.msra.gmra.mrb[28].mxu1 %v452_v33  ;;  %1825 = vmatpush1.bf16.msra.mxu0 %v4332_v40  ;;  %v432_v33 = vld [vmem:[%s5001_s10 + $0x238] sm:$0xff] }
  0xe8   : > { %2227 = vmatpush1.bf16.msra.mxu1 %v4335_v41  ;;  %1826 = vmatprep.subr.bf16.mxu0 %v4340_v44  ;;  %v4383_v40 = vld [vmem:[#allocation5 + $0x308] ss:$16 sps:$4 sm:$0xff]   ;;  %v488_v41 = vpack.c.bf16 %v439_v34, %v432_v33  ;;  %v4388_v44 = vld [vmem:[#allocation5 + $0x344] ss:$16 sps:$4 sm:$0xff]  }
  0xe9   : > { %2228 = vmatprep.subr.bf16.mxu1 %v4343_v45  ;;  %2167 = vmatprep.mubr.bf16.mxu1 %v460_v39  ;;  %v4380_v39 = vld [vmem:[#allocation5 + $0x320] ss:$16 sps:$4 sm:$0xff]   ;;  %v4391_v45 = vld [vmem:[#allocation5 + $0x32c] ss:$16 sps:$4 sm:$0xff]   ;;  %v4436_v33 = vld [vmem:[#allocation5 + $0x444] ss:$16 sps:$4 sm:$0xff]  }
  0xea   : > { %1764 = vmatmul.mubr.bf16.gmra.mrb[4].mxu0 %v459_v48  ;;  %v377_v34 = vld [vmem:[%s5001_s10 + $0x80] sm:$0xff] }
  0xeb   : > { %1827 = vmatpush1.bf16.msra.mxu0 %v4338_v50  ;;  %1773 = vmatprep.mubr.bf16.mxu0 %v467_v54  ;;  %v4389_v50 = vld [vmem:[#allocation5 + $0x328] ss:$16 sps:$4 sm:$0xff]  }
  0xec   : > { %2229 = vmatpush1.bf16.msra.mxu1 %v4341_v51  ;;  %1828 = vmatprep.subr.bf16.mxu0 %v4346_v52  ;;  %v4394_v51 = vld [vmem:[#allocation5 + $0x364] ss:$16 sps:$4 sm:$0xff]   ;;  %v4397_v52 = vld [vmem:[#allocation5 + $0x34c] ss:$16 sps:$4 sm:$0xff]  }
  0xed   : > { %2230 = vmatprep.subr.bf16.mxu1 %v4349_v53  ;;  %v495_v53 = vpack.c.bf16 %v446_v49, %v446_v49  ;;  %v4448_v49 = vld [vmem:[#allocation5 + $0x484] ss:$16 sps:$4 sm:$0xff]  }
  0xef   : > { %2168 = vmatmul.mubr.bf16.gmra.mrb[32].mxu1 %v459_v48  ;;  %1829 = vmatpush1.bf16.msra.mxu0 %v4344_v55  ;;  %v487_v48 = vpack.c.bf16 %v438_v43, %v431_v42  ;;  %v4395_v55 = vld [vmem:[#allocation5 + $0x348] ss:$16 sps:$4 sm:$0xff]   ;;  %v4442_v43 = vld [vmem:[#allocation5 + $0x464] ss:$16 sps:$4 sm:$0xff]  }
  0xf0   : > { %2231 = vmatpush1.bf16.msra.mxu1 %v4347_v56  ;;  %1830 = vmatprep.subr.bf16.mxu0 %v4352_v60  ;;  %v4400_v56 = vld [vmem:[#allocation5 + $0x384] ss:$16 sps:$4 sm:$0xff]   ;;  %v4398_v60 = vld [vmem:[#allocation5 + $0x380] ss:$16 sps:$4 sm:$0xff]   ;;  %v4437_v42 = vld [vmem:[#allocation5 + $0x428] ss:$16 sps:$4 sm:$0xff]  }
  0xf1   : > { %2232 = vmatprep.subr.bf16.mxu1 %v4355_v61  ;;  %2177 = vmatprep.mubr.bf16.mxu1 %v467_v54  ;;  %v4392_v54 = vld [vmem:[#allocation5 + $0x360] ss:$16 sps:$4 sm:$0xff]   ;;  %v494_v61 = vpack.c.bf16 %v445_v58, %v445_v58  ;;  %v4449_v58 = vld [vmem:[#allocation5 + $0x468] ss:$16 sps:$4 sm:$0xff]  }
  0xf2   : > { %1774 = vmatmul.mubr.bf16.gmra.mrb[8].mxu0 %v466_v63 }
  0xf3   : > { %1831 = vmatpush1.bf16.msra.mxu0 %v4350_v62  ;;  %1783 = vmatprep.mubr.bf16.mxu0 %v474_v10  ;;  %v364_v62 = vld [vmem:[%s5001_s10 + $0x18] sm:$0xff] }
  0xf4   : > { %2233 = vmatpush1.bf16.msra.mxu1 %v4353_v3  ;;  %1832 = vmatprep.subr.bf16.mxu0 %v4358_v4  ;;  %v4409_v3 = vld [vmem:[#allocation5 + $0x38c] ss:$16 sps:$4 sm:$0xff]  }
  0xf5   : > { %2234 = vmatprep.subr.bf16.mxu1 %v4361_v5  ;;  %v4404_v5 = vld [vmem:[#allocation5 + $0x3a0] ss:$16 sps:$4 sm:$0xff]  }
  0xf7   : > { %2178 = vmatmul.mubr.bf16.gmra.mrb[36].mxu1 %v466_v63  ;;  %1833 = vmatpush1.bf16.msra.mxu0 %v4356_v7  ;;  %v371_v63 = vld [vmem:[%s5001_s10 + $0x50] sm:$0xff] }
  0xf8   : > { %2235 = vmatpush1.bf16.msra.mxu1 %v4359_v9  ;;  %1834 = vmatprep.subr.bf16.mxu0 %v4364_v13  ;;  %v455_v4 = vpack.c.bf16 %v371_v63, %v364_v62  ;;  %v4407_v7 = vld [vmem:[#allocation5 + $0x388] ss:$16 sps:$4 sm:$0xff]   ;;  %v4412_v9 = vld [vmem:[#allocation5 + $0x3c4] ss:$16 sps:$4 sm:$0xff]  }
  0xf9   : > { %2236 = vmatprep.subr.bf16.mxu1 %v4367_v14  ;;  %2187 = vmatprep.mubr.bf16.mxu1 %v474_v10  ;;  %v4415_v10 = vld [vmem:[#allocation5 + $0x3ac] ss:$16 sps:$4 sm:$0xff]   ;;  %v4418_v13 = vld [vmem:[#allocation5 + $0x3e4] ss:$16 sps:$4 sm:$0xff]   ;;  %v4455_v62 = vld [vmem:[#allocation5 + $0x488] ss:$16 sps:$4 sm:$0xff]  }
  0xfa   : > { %1784 = vmatmul.mubr.bf16.gmra.mrb[12].mxu0 %v473_v15  ;;  %v4421_v14 = vld [vmem:[#allocation5 + $0x3cc] ss:$16 sps:$4 sm:$0xff]  }
  0xfb   : > { %1835 = vmatpush1.bf16.msra.mxu0 %v4362_v18  ;;  %1793 = vmatprep.mubr.bf16.mxu0 %v481_v24  ;;  %v363_v18 = vld [vmem:[%s5001_s10 + $0x10] sm:$0xff] }
  0xfc   : > { %2237 = vmatpush1.bf16.msra.mxu1 %v4365_v20  ;;  %1836 = vmatprep.subr.bf16.mxu0 %v4370_v21  ;;  %v370_v20 = vld [vmem:[%s5001_s10 + $0x48] sm:$0xff] }
  0xfd   : > { %2238 = vmatprep.subr.bf16.mxu1 %v4373_v22  ;;  %v4427_v21 = vld [vmem:[#allocation5 + $0x3ec] ss:$16 sps:$4 sm:$0xff]   ;;  %v4422_v22 = vld [vmem:[#allocation5 + $0x400] ss:$16 sps:$4 sm:$0xff]  }
  0xff   : > { %2188 = vmatmul.mubr.bf16.gmra.mrb[40].mxu1 %v473_v15  ;;  %1837 = vmatpush1.bf16.msra.mxu0 %v4368_v23  ;;  %v4416_v15 = vld [vmem:[#allocation5 + $0x3e0] ss:$16 sps:$4 sm:$0xff]   ;;  %v454_v23 = vpack.c.bf16 %v370_v20, %v363_v18  ;;  %v4472_v20 = vld [vmem:[#allocation5 + $0x504] ss:$16 sps:$4 sm:$0xff]  }
 0x100   : > { %2239 = vmatpush1.bf16.msra.mxu1 %v4371_v26  ;;  %1838 = vmatprep.subr.bf16.mxu0 %v4376_v29  ;;  %v385_v26 = vld [vmem:[%s5001_s10 + $0xc0] sm:$0xff]  ;;  %v426_v18 = vld [vmem:[%s5001_s10 + $0x208] sm:$0xff] }
 0x101   : > { %2240 = vmatprep.subr.bf16.mxu1 %v4379_v30  ;;  %2197 = vmatprep.mubr.bf16.mxu1 %v481_v24  ;;  %v378_v24 = vld [vmem:[%s5001_s10 + $0x88] sm:$0xff] }
 0x102   : > { %1794 = vmatmul.mubr.bf16.gmra.mrb[16].mxu0 %v480_v32  ;;  %v4433_v29 = vld [vmem:[#allocation5 + $0x40c] ss:$16 sps:$4 sm:$0xff]   ;;  %v4428_v30 = vld [vmem:[#allocation5 + $0x420] ss:$16 sps:$4 sm:$0xff]  }
 0x103   : > { %1839 = vmatpush1.bf16.msra.mxu0 %v4374_v31  ;;  %1803 = vmatprep.mubr.bf16.mxu0 %v488_v41  ;;  %v462_v31 = vpack.c.bf16 %v385_v26, %v378_v24  ;;  %v434_v24 = vld [vmem:[%s5001_s10 + $0x248] sm:$0xff]  ;;  %v441_v26 = vld [vmem:[%s5001_s10 + $0x280] sm:$0xff] }
 0x104   : > { %2241 = vmatpush1.bf16.msra.mxu1 %v4377_v36  ;;  %1840 = vmatprep.subr.bf16.mxu0 %v4382_v37  ;;  %v384_v36 = vld [vmem:[%s5001_s10 + $0xb8] sm:$0xff] }
 0x105   : > { %2242 = vmatprep.subr.bf16.mxu1 %v4385_v38  ;;  %v4439_v37 = vld [vmem:[#allocation5 + $0x42c] ss:$16 sps:$4 sm:$0xff]   ;;  %v461_v38 = vpack.c.bf16 %v384_v36, %v377_v34  ;;  %v4484_v36 = vld [vmem:[#allocation5 + $0x544] ss:$16 sps:$4 sm:$0xff]  }
 0x106   : > { %v440_v34 = vld [vmem:[%s5001_s10 + $0x278] sm:$0xff] }
 0x107   : > { %2198 = vmatmul.mubr.bf16.gmra.mrb[44].mxu1 %v480_v32  ;;  %1841 = vmatpush1.bf16.msra.mxu0 %v4380_v39  ;;  %v4431_v32 = vld [vmem:[#allocation5 + $0x408] ss:$16 sps:$4 sm:$0xff]  }
 0x108   : > { %2243 = vmatpush1.bf16.msra.mxu1 %v4383_v40  ;;  %1842 = vmatprep.subr.bf16.mxu0 %v4388_v44  ;;  %v392_v39 = vld [vmem:[%s5001_s10 + $0xf8] sm:$0xff]  ;;  %v399_v40 = vld [vmem:[%s5001_s10 + $0x130] sm:$0xff] }
 0x109   : > { %2244 = vmatprep.subr.bf16.mxu1 %v4391_v45  ;;  %2207 = vmatprep.mubr.bf16.mxu1 %v488_v41  ;;  %v4434_v41 = vld [vmem:[#allocation5 + $0x440] ss:$16 sps:$4 sm:$0xff]   ;;  %v4445_v44 = vld [vmem:[#allocation5 + $0x44c] ss:$16 sps:$4 sm:$0xff]  }
 0x10a   : > { %1804 = vmatmul.mubr.bf16.gmra.mrb[20].mxu0 %v487_v48  ;;  %v4440_v45 = vld [vmem:[#allocation5 + $0x460] ss:$16 sps:$4 sm:$0xff]  }
 0x10b   : > { %1843 = vmatpush1.bf16.msra.mxu0 %v4386_v47  ;;  %1813 = vmatprep.mubr.bf16.mxu0 %v495_v53  ;;  %v469_v47 = vpack.c.bf16 %v399_v40, %v392_v39  ;;  %v4482_v39 = vld [vmem:[#allocation5 + $0x540] ss:$16 sps:$4 sm:$0xff]   ;;  %v4485_v40 = vld [vmem:[#allocation5 + $0x528] ss:$16 sps:$4 sm:$0xff]  }
 0x10c   : > { %2245 = vmatpush1.bf16.msra.mxu1 %v4389_v50  ;;  %1844 = vmatprep.subr.bf16.mxu0 %v4394_v51  ;;  %v391_v50 = vld [vmem:[%s5001_s10 + $0xf0] sm:$0xff]  ;;  %v398_v51 = vld [vmem:[%s5001_s10 + $0x128] sm:$0xff] }
 0x10d   : > { %2246 = vmatprep.subr.bf16.mxu1 %v4397_v52  ;;  %v4451_v52 = vld [vmem:[#allocation5 + $0x46c] ss:$16 sps:$4 sm:$0xff]  }
 0x10f   : > { %2208 = vmatmul.mubr.bf16.gmra.mrb[48].mxu1 %v487_v48  ;;  %1845 = vmatpush1.bf16.msra.mxu0 %v4392_v54  ;;  %v4443_v48 = vld [vmem:[#allocation5 + $0x448] ss:$16 sps:$4 sm:$0xff]   ;;  %v468_v54 = vpack.c.bf16 %v398_v51, %v391_v50  ;;  %v4499_v50 = vld [vmem:[#allocation5 + $0x56c] ss:$16 sps:$4 sm:$0xff]  }
 0x110   : > { %2247 = vmatpush1.bf16.msra.mxu1 %v4395_v55  ;;  %1846 = vmatprep.subr.bf16.mxu0 %v4400_v56  ;;  %v406_v55 = vld [vmem:[%s5001_s10 + $0x168] sm:$0xff]  ;;  %v413_v56 = vld [vmem:[%s5001_s10 + $0x1a0] sm:$0xff] }
 0x111   : > { %2248 = vmatprep.subr.bf16.mxu1 %v4403_v59  ;;  %2217 = vmatprep.mubr.bf16.mxu1 %v495_v53  ;;  %v4446_v53 = vld [vmem:[#allocation5 + $0x480] ss:$16 sps:$4 sm:$0xff]   ;;  %v4454_v59 = vld [vmem:[#allocation5 + $0x4a4] ss:$16 sps:$4 sm:$0xff]   ;;  %v476_v63 = vpack.c.bf16 %v413_v56, %v406_v55  ;;  %v4497_v55 = vld [vmem:[#allocation5 + $0x568] ss:$16 sps:$4 sm:$0xff]  }
 0x112   : > { %1814 = vmatmul.mubr.bf16.gmra.mrb[24].mxu0 %v494_v61  ;;  %v4502_v56 = vld [vmem:[#allocation5 + $0x5a4] ss:$16 sps:$4 sm:$0xff]  }
 0x113   : > { %1847 = vmatpush1.bf16.msra.mxu0 %v4398_v60  ;;  %1854 = vmatprep.mubr.bf16.mxu0 %v455_v4  ;;  %v4457_v60 = vld [vmem:[#allocation5 + $0x48c] ss:$16 sps:$4 sm:$0xff]  }
 0x114   : > { %2249 = vmatpush1.bf16.msra.mxu1 %v4401_v1  ;;  %1848 = vmatprep.subr.bf16.mxu0 %v4406_v2  ;;  %v405_v1 = vld [vmem:[%s5001_s10 + $0x160] sm:$0xff]  ;;  %v412_v2 = vld [vmem:[%s5001_s10 + $0x198] sm:$0xff] }
 0x115   : > { %2250 = vmatprep.subr.bf16.mxu1 %v4409_v3  ;;  %v4460_v3 = vld [vmem:[#allocation5 + $0x4c4] ss:$16 sps:$4 sm:$0xff]  }
 0x117   : > { %2218 = vmatmul.mubr.bf16.gmra.mrb[52].mxu1 %v494_v61  ;;  %1849 = vmatpush1.bf16.msra.mxu0 %v4404_v5  ;;  %v4452_v61 = vld [vmem:[#allocation5 + $0x4a0] ss:$16 sps:$4 sm:$0xff]  }
 0x118   : > { %2251 = vmatpush1.bf16.msra.mxu1 %v4407_v7  ;;  %1850 = vmatprep.subr.bf16.mxu0 %v4412_v9  ;;  %v4458_v5 = vld [vmem:[#allocation5 + $0x4c0] ss:$16 sps:$4 sm:$0xff]   ;;  %v475_v9 = vpack.c.bf16 %v412_v2, %v405_v1  ;;  %v4509_v2 = vld [vmem:[#allocation5 + $0x5a8] ss:$16 sps:$4 sm:$0xff]  }
 0x119   : > { %2252 = vmatprep.subr.bf16.mxu1 %v4415_v10  ;;  %2258 = vmatprep.mubr.bf16.mxu1 %v455_v4  ;;  %v4463_v4 = vld [vmem:[#allocation5 + $0x4ac] ss:$16 sps:$4 sm:$0xff]   ;;  %v4506_v1 = vld [vmem:[#allocation5 + $0x5c0] ss:$16 sps:$4 sm:$0xff]  }
 0x11a   : > { %v420_v7 = vld [vmem:[%s5001_s10 + $0x1d8] sm:$0xff]  ;;  %v427_v10 = vld [vmem:[%s5001_s10 + $0x210] sm:$0xff] }
 0x11b   : > { %1851 = vmatpush1.bf16.msra.mxu0 %v4410_v11  ;;  %v4461_v11 = vld [vmem:[#allocation5 + $0x4a8] ss:$16 sps:$4 sm:$0xff]  }
 0x11c   : > { %2253 = vmatpush1.bf16.msra.mxu1 %v4413_v12  ;;  %1852 = vmatprep.subr.bf16.mxu0 %v4418_v13  ;;  %v4466_v12 = vld [vmem:[#allocation5 + $0x4e4] ss:$16 sps:$4 sm:$0xff]   ;;  %v4469_v13 = vld [vmem:[#allocation5 + $0x4cc] ss:$16 sps:$4 sm:$0xff]  }
 0x11d   : > { %2254 = vmatprep.subr.bf16.mxu1 %v4421_v14  ;;  %v483_v14 = vpack.c.bf16 %v427_v10, %v420_v7  ;;  %v4515_v7 = vld [vmem:[#allocation5 + $0x5c8] ss:$16 sps:$4 sm:$0xff]  }
 0x11e   : > { %v372_v10 = vld [vmem:[%s5001_s10 + $0x58] sm:$0xff] }
 0x11f   : > { %1853 = vmatpush1.bf16.msra.mxu0 %v4416_v15  ;;  %v4464_v15 = vld [vmem:[#allocation5 + $0x4e0] ss:$16 sps:$4 sm:$0xff]  }
 0x120   : > { %2255 = vmatpush1.bf16.msra.mxu1 %v4419_v16  ;;  %1923 = vmatprep.subr.bf16.mxu0 %v4424_v17  ;;  %v4467_v16 = vld [vmem:[#allocation5 + $0x4c8] ss:$16 sps:$4 sm:$0xff]  }
 0x121   : > { %2256 = vmatprep.subr.bf16.mxu1 %v4427_v21  ;;  %v419_v17 = vld [vmem:[%s5001_s10 + $0x1d0] sm:$0xff] }
 0x122   : > { %1855 = vmatmul.mubr.bf16.vlgmr.msra.gmra.mrb[0].mxu0 %v454_v23  ;;  %v4475_v21 = vld [vmem:[#allocation5 + $0x4ec] ss:$16 sps:$4 sm:$0xff]  }
 0x123   : > { %1924 = vmatpush1.bf16.msra.mxu0 %v4422_v22  ;;  %1864 = vmatprep.mubr.bf16.mxu0 %v462_v31  ;;  %v4470_v22 = vld [vmem:[#allocation5 + $0x500] ss:$16 sps:$4 sm:$0xff]  }
 0x124   : > { %2257 = vmatpush1.bf16.msra.mxu1 %v4425_v27  ;;  %1925 = vmatprep.subr.bf16.mxu0 %v4430_v28  ;;  %v4473_v27 = vld [vmem:[#allocation5 + $0x4e8] ss:$16 sps:$4 sm:$0xff]   ;;  %v4478_v28 = vld [vmem:[#allocation5 + $0x524] ss:$16 sps:$4 sm:$0xff]  }
 0x125   : > { %2327 = vmatprep.subr.bf16.mxu1 %v4433_v29  ;;  %v4481_v29 = vld [vmem:[#allocation5 + $0x50c] ss:$16 sps:$4 sm:$0xff]  }
 0x127   : > { %2259 = vmatmul.mubr.bf16.vlgmr.msra.gmra.mrb[28].mxu1 %v454_v23  ;;  %1926 = vmatpush1.bf16.msra.mxu0 %v4428_v30  ;;  %v482_v23 = vpack.c.bf16 %v426_v18, %v419_v17  ;;  %v4476_v30 = vld [vmem:[#allocation5 + $0x520] ss:$16 sps:$4 sm:$0xff]   ;;  %v4523_v18 = vld [vmem:[#allocation5 + $0x60c] ss:$16 sps:$4 sm:$0xff]  }
 0x128   : > { %2328 = vmatpush1.bf16.msra.mxu1 %v4431_v32  ;;  %1927 = vmatprep.subr.bf16.mxu0 %v4436_v33  ;;  %v490_v32 = vpack.c.bf16 %v441_v26, %v434_v24  ;;  %v433_v33 = vld [vmem:[%s5001_s10 + $0x240] sm:$0xff]  ;;  %v386_v24 = vld [vmem:[%s5001_s10 + $0xc8] sm:$0xff] }
 0x129   : > { %2329 = vmatprep.subr.bf16.mxu1 %v4439_v37  ;;  %2268 = vmatprep.mubr.bf16.mxu1 %v462_v31  ;;  %v4479_v31 = vld [vmem:[#allocation5 + $0x508] ss:$16 sps:$4 sm:$0xff]   ;;  %v4487_v37 = vld [vmem:[#allocation5 + $0x52c] ss:$16 sps:$4 sm:$0xff]  }
 0x12a   : > { %1865 = vmatmul.mubr.bf16.gmra.mrb[4].mxu0 %v461_v38  ;;  %v394_v26 = vld [vmem:[%s5001_s10 + $0x108] sm:$0xff] }
 0x12b   : > { %1928 = vmatpush1.bf16.msra.mxu0 %v4434_v41  ;;  %1874 = vmatprep.mubr.bf16.mxu0 %v469_v47  ;;  %v4490_v41 = vld [vmem:[#allocation5 + $0x564] ss:$16 sps:$4 sm:$0xff]  }
 0x12c   : > { %2330 = vmatpush1.bf16.msra.mxu1 %v4437_v42  ;;  %1929 = vmatprep.subr.bf16.mxu0 %v4442_v43  ;;  %v4493_v42 = vld [vmem:[#allocation5 + $0x54c] ss:$16 sps:$4 sm:$0xff]   ;;  %v489_v43 = vpack.c.bf16 %v440_v34, %v433_v33 }
 0x12d   : > { %2331 = vmatprep.subr.bf16.mxu1 %v4445_v44  ;;  %v4488_v44 = vld [vmem:[#allocation5 + $0x560] ss:$16 sps:$4 sm:$0xff]   ;;  %v4530_v33 = vld [vmem:[#allocation7 + $0x58] sm:$0xff]  }
 0x12e   : > { %v393_v34 = vld [vmem:[%s5001_s10 + $0x100] sm:$0xff] }
 0x12f   : > { %2269 = vmatmul.mubr.bf16.gmra.mrb[32].mxu1 %v461_v38  ;;  %1930 = vmatpush1.bf16.msra.mxu0 %v4440_v45  ;;  %v448_v38 = vld [vmem:[%s5001_s10 + $0x2b8] sm:$0xff] }
 0x130   : > { %2332 = vmatpush1.bf16.msra.mxu1 %v4443_v48  ;;  %1931 = vmatprep.subr.bf16.mxu0 %v4448_v49  ;;  %v4491_v45 = vld [vmem:[#allocation5 + $0x548] ss:$16 sps:$4 sm:$0xff]   ;;  %v4496_v49 = vld [vmem:[#allocation5 + $0x584] ss:$16 sps:$4 sm:$0xff]  }
 0x131   : > { %2333 = vmatprep.subr.bf16.mxu1 %v4451_v52  ;;  %2278 = vmatprep.mubr.bf16.mxu1 %v469_v47  ;;  %v497_v47 = vpack.c.bf16 %v448_v38, %v448_v38  ;;  %v447_v48 = vld [vmem:[%s5001_s10 + $0x2b0] sm:$0xff]  ;;  %v366_v52 = vld [vmem:[%s5001_s10 + $0x28] sm:$0xff] }
 0x132   : > { %1875 = vmatmul.mubr.bf16.gmra.mrb[8].mxu0 %v468_v54  ;;  %v496_v51 = vpack.c.bf16 %v447_v48, %v447_v48  ;;  %v415_v38 = vld [vmem:[%s5001_s10 + $0x1b0] sm:$0xff]  ;;  %v429_v48 = vld [vmem:[%s5001_s10 + $0x220] sm:$0xff] }
 0x133   : > { %1932 = vmatpush1.bf16.msra.mxu0 %v4446_v53  ;;  %1884 = vmatprep.mubr.bf16.mxu0 %v476_v63  ;;  %v373_v53 = vld [vmem:[%s5001_s10 + $0x60] sm:$0xff] }
 0x134   : > { %2334 = vmatpush1.bf16.msra.mxu1 %v4449_v58  ;;  %1933 = vmatprep.subr.bf16.mxu0 %v4454_v59  ;;  %v4505_v58 = vld [vmem:[#allocation5 + $0x58c] ss:$16 sps:$4 sm:$0xff]   ;;  %v4500_v59 = vld [vmem:[#allocation5 + $0x5a0] ss:$16 sps:$4 sm:$0xff]  }
 0x135   : > { %2335 = vmatprep.subr.bf16.mxu1 %v4457_v60  ;;  %v4503_v60 = vld [vmem:[#allocation5 + $0x588] ss:$16 sps:$4 sm:$0xff]  }
 0x137   : > { %2279 = vmatmul.mubr.bf16.gmra.mrb[36].mxu1 %v468_v54  ;;  %1934 = vmatpush1.bf16.msra.mxu0 %v4452_v61  ;;  %v4494_v54 = vld [vmem:[#allocation5 + $0x580] ss:$16 sps:$4 sm:$0xff]   ;;  %v457_v61 = vpack.c.bf16 %v373_v53, %v366_v52 }
 0x138   : > { %2336 = vmatpush1.bf16.msra.mxu1 %v4455_v62  ;;  %1935 = vmatprep.subr.bf16.mxu0 %v4460_v3  ;;  %v4508_v62 = vld [vmem:[#allocation5 + $0x5c4] ss:$16 sps:$4 sm:$0xff]  }
 0x139   : > { %2337 = vmatprep.subr.bf16.mxu1 %v4463_v4  ;;  %2288 = vmatprep.mubr.bf16.mxu1 %v476_v63  ;;  %v4511_v63 = vld [vmem:[#allocation5 + $0x5ac] ss:$16 sps:$4 sm:$0xff]   ;;  %v4514_v3 = vld [vmem:[#allocation5 + $0x5e4] ss:$16 sps:$4 sm:$0xff]  }
 0x13a   : > { %1885 = vmatmul.mubr.bf16.gmra.mrb[12].mxu0 %v475_v9  ;;  %v4517_v4 = vld [vmem:[#allocation5 + $0x5cc] ss:$16 sps:$4 sm:$0xff]  }
 0x13b   : > { %1936 = vmatpush1.bf16.msra.mxu0 %v4458_v5  ;;  %1894 = vmatprep.mubr.bf16.mxu0 %v483_v14  ;;  %v4512_v5 = vld [vmem:[#allocation5 + $0x5e0] ss:$16 sps:$4 sm:$0xff]  }
 0x13c   : > { %2338 = vmatpush1.bf16.msra.mxu1 %v4461_v11  ;;  %1937 = vmatprep.subr.bf16.mxu0 %v4466_v12  ;;  %v4520_v11 = vld [vmem:[#allocation5 + $0x5ec] ss:$16 sps:$4 sm:$0xff]  }
 0x13d   : > { %2339 = vmatprep.subr.bf16.mxu1 %v4469_v13  ;;  %v380_v12 = vld [vmem:[%s5001_s10 + $0x98] sm:$0xff]  ;;  %v387_v13 = vld [vmem:[%s5001_s10 + $0xd0] sm:$0xff] }
 0x13e   : > { %v464_v17 = vpack.c.bf16 %v387_v13, %v380_v12 }
 0x13f   : > { %2289 = vmatmul.mubr.bf16.gmra.mrb[40].mxu1 %v475_v9  ;;  %1938 = vmatpush1.bf16.msra.mxu0 %v4464_v15  ;;  %v365_v9 = vld [vmem:[%s5001_s10 + $0x20] sm:$0xff] }
 0x140   : > { %2340 = vmatpush1.bf16.msra.mxu1 %v4467_v16  ;;  %1939 = vmatprep.subr.bf16.mxu0 %v4472_v20  ;;  %v456_v15 = vpack.c.bf16 %v372_v10, %v365_v9  ;;  %v4518_v16 = vld [vmem:[#allocation5 + $0x5e8] ss:$16 sps:$4 sm:$0xff]   ;;  %v4525_v20 = vld [vmem:[#allocation7] sm:$0xff]  }
 0x141   : > { %2341 = vmatprep.subr.bf16.mxu1 %v4475_v21  ;;  %2298 = vmatprep.mubr.bf16.mxu1 %v483_v14  ;;  %v4524_v14 = vld [vmem:[#allocation7 + $0x40] sm:$0xff]   ;;  %v4526_v21 = vld [vmem:[#allocation7 + $0x48] sm:$0xff]  }
 0x142   : > { %1895 = vmatmul.mubr.bf16.gmra.mrb[16].mxu0 %v482_v23  ;;  %v449_v10 = vld [vmem:[%s5001_s10 + $0x2c0] sm:$0xff] }
 0x143   : > { %1940 = vmatpush1.bf16.msra.mxu0 %v4470_v22  ;;  %1904 = vmatprep.mubr.bf16.mxu0 %v490_v32  ;;  %v4521_v22 = vld [vmem:[#allocation5 + $0x608] ss:$16 sps:$4 sm:$0xff]  }
 0x144   : > { %2342 = vmatpush1.bf16.msra.mxu1 %v4473_v27  ;;  %1941 = vmatprep.subr.bf16.mxu0 %v4478_v28  ;;  %v401_v27 = vld [vmem:[%s5001_s10 + $0x140] sm:$0xff] }
 0x145   : > { %2343 = vmatprep.subr.bf16.mxu1 %v4481_v29  ;;  %v4527_v28 = vld [vmem:[#allocation7 + $0x8] sm:$0xff]   ;;  %v4528_v29 = vld [vmem:[#allocation7 + $0x50] sm:$0xff]  }
 0x147   : > { %2299 = vmatmul.mubr.bf16.gmra.mrb[44].mxu1 %v482_v23  ;;  %1942 = vmatpush1.bf16.msra.mxu0 %v4476_v30  ;;  %v379_v23 = vld [vmem:[%s5001_s10 + $0x90] sm:$0xff] }
 0x148   : > { %2344 = vmatpush1.bf16.msra.mxu1 %v4479_v31  ;;  %1943 = vmatprep.subr.bf16.mxu0 %v4484_v36  ;;  %v463_v30 = vpack.c.bf16 %v386_v24, %v379_v23  ;;  %v471_v31 = vpack.c.bf16 %v401_v27, %v394_v26  ;;  %v400_v36 = vld [vmem:[%s5001_s10 + $0x138] sm:$0xff] }
 0x149   : > { %2345 = vmatprep.subr.bf16.mxu1 %v4487_v37  ;;  %2308 = vmatprep.mubr.bf16.mxu1 %v490_v32  ;;  %v4529_v32 = vld [vmem:[#allocation7 + $0x10] sm:$0xff]   ;;  %v408_v37 = vld [vmem:[%s5001_s10 + $0x178] sm:$0xff] }
 0x14a   : > { %1905 = vmatmul.mubr.bf16.gmra.mrb[20].mxu0 %v489_v43 }
 0x14b   : > { %1944 = vmatpush1.bf16.msra.mxu0 %v4482_v39  ;;  %1914 = vmatprep.mubr.bf16.mxu0 %v497_v47  ;;  %v4531_v39 = vld [vmem:[#allocation7 + $0x18] sm:$0xff]  }
 0x14c   : > { %2346 = vmatpush1.bf16.msra.mxu1 %v4485_v40  ;;  %1945 = vmatprep.subr.bf16.mxu0 %v4490_v41  ;;  %v4532_v40 = vld [vmem:[#allocation7 + $0x60] sm:$0xff]   ;;  %v470_v41 = vpack.c.bf16 %v400_v36, %v393_v34  ;;  %v4535_v34 = vld [vmem:[#allocation7 + $0x28] sm:$0xff]   ;;  %v4537_v36 = vld [vmem:[#allocation7 + $0x30] sm:$0xff]  }
 0x14d   : > { %2347 = vmatprep.subr.bf16.mxu1 %v4493_v42  ;;  %v478_v42 = vpack.c.bf16 %v415_v38, %v408_v37  ;;  %v4538_v37 = vld [vmem:[#allocation7 + $0x78] sm:$0xff]  }
 0x14e   : > { %v4539_v38 = vld [vmem:[#allocation7 + $0x38] sm:$0xff]  }
 0x14f   : > { %2309 = vmatmul.mubr.bf16.gmra.mrb[48].mxu1 %v489_v43  ;;  %1946 = vmatpush1.bf16.msra.mxu0 %v4488_v44  ;;  %v4533_v43 = vld [vmem:[#allocation7 + $0x20] sm:$0xff]  }
 0x150   : > { %2348 = vmatpush1.bf16.msra.mxu1 %v4491_v45  ;;  %1947 = vmatprep.subr.bf16.mxu0 %v4496_v49  ;;  %v407_v44 = vld [vmem:[%s5001_s10 + $0x170] sm:$0xff]  ;;  %v414_v45 = vld [vmem:[%s5001_s10 + $0x1a8] sm:$0xff] }
 0x151   : > { %2349 = vmatprep.subr.bf16.mxu1 %v4499_v50  ;;  %2318 = vmatprep.mubr.bf16.mxu1 %v497_v47  ;;  %v422_v47 = vld [vmem:[%s5001_s10 + $0x1e8] sm:$0xff]  ;;  %v477_v49 = vpack.c.bf16 %v414_v45, %v407_v44  ;;  %v4550_v44 = vld [vmem:[#allocation7 + $0xe8] sm:$0xff]  }
 0x152   : > { %1915 = vmatmul.mubr.bf16.gmra.mrb[24].mxu0 %v496_v51  ;;  %v485_v50 = vpack.c.bf16 %v429_v48, %v422_v47  ;;  %v4551_v45 = vld [vmem:[#allocation7 + $0xa8] sm:$0xff]   ;;  %v4552_v47 = vld [vmem:[#allocation7 + $0xf0] sm:$0xff]   ;;  %v4554_v48 = vld [vmem:[#allocation7 + $0xf8] sm:$0xff]  }
 0x153   : > { %1948 = vmatpush1.bf16.msra.mxu0 %v4494_v54  ;;  %1955 = vmatprep.mubr.bf16.mxu0 %v457_v61  ;;  %v421_v54 = vld [vmem:[%s5001_s10 + $0x1e0] sm:$0xff] }
 0x154   : > { %2350 = vmatpush1.bf16.msra.mxu1 %v4497_v55  ;;  %1949 = vmatprep.subr.bf16.mxu0 %v4502_v56  ;;  %v428_v55 = vld [vmem:[%s5001_s10 + $0x218] sm:$0xff] }
 0x155   : > { %2351 = vmatprep.subr.bf16.mxu1 %v4505_v58  ;;  %v436_v58 = vld [vmem:[%s5001_s10 + $0x258] sm:$0xff] }
 0x157   : > { %2319 = vmatmul.mubr.bf16.gmra.mrb[52].mxu1 %v496_v51  ;;  %1950 = vmatpush1.bf16.msra.mxu0 %v4500_v59  ;;  %v443_v59 = vld [vmem:[%s5001_s10 + $0x290] sm:$0xff] }
 0x158   : > { %2352 = vmatpush1.bf16.msra.mxu1 %v4503_v60  ;;  %1951 = vmatprep.subr.bf16.mxu0 %v4508_v62  ;;  %v484_v60 = vpack.c.bf16 %v428_v55, %v421_v54  ;;  %v435_v62 = vld [vmem:[%s5001_s10 + $0x250] sm:$0xff] }
 0x159   : > { %2353 = vmatprep.subr.bf16.mxu1 %v4511_v63  ;;  %2359 = vmatprep.mubr.bf16.mxu1 %v457_v61  ;;  %v492_v61 = vpack.c.bf16 %v443_v59, %v436_v58  ;;  %v442_v63 = vld [vmem:[%s5001_s10 + $0x288] sm:$0xff] }
 0x15a   : > { %v5220_v58 = vld [vmem:[%s5454_s2] sm:$0xf] }
 0x15b   : > { %1952 = vmatpush1.bf16.msra.mxu0 %v4506_v1 }
 0x15c   : > { %2354 = vmatpush1.bf16.msra.mxu1 %v4509_v2  ;;  %1953 = vmatprep.subr.bf16.mxu0 %v4514_v3  ;;  %v450_v2 = vld [vmem:[%s5001_s10 + $0x2c8] sm:$0xff] }
 0x15d   : > { %2355 = vmatprep.subr.bf16.mxu1 %v4517_v4  ;;  %v499_v9 = vpack.c.bf16 %v450_v2, %v450_v2 }
 0x15f   : > { %1954 = vmatpush1.bf16.msra.mxu0 %v4512_v5  ;;  %v491_v5 = vpack.c.bf16 %v442_v63, %v435_v62 }
 0x160   : > { %2356 = vmatpush1.bf16.msra.mxu1 %v4515_v7  ;;  %3751 = vmatprep.subr.bf16.mxu0 %v4524_v14  ;;  %v498_v14 = vpack.c.bf16 %v449_v10, %v449_v10 }
 0x161   : > { %2357 = vmatprep.subr.bf16.mxu1 %v4520_v11 }
 0x162   : > { %1956 = vmatmul.mubr.bf16.vlgmr.msra.gmra.mrb[0].mxu0 %v456_v15 }
 0x163   : > { %1965 = vmatprep.mubr.bf16.mxu0 %v464_v17  ;;  %3752 = vmatpush3.bf16.msra.mxu0 %v4525_v20 }
 0x164   : > { %2358 = vmatpush1.bf16.msra.mxu1 %v4518_v16  ;;  %3753 = vmatprep.subr.bf16.mxu0 %v4526_v21 }
 0x165   : > { %2428 = vmatprep.subr.bf16.mxu1 %v4523_v18 }
 0x167   : > { %2360 = vmatmul.mubr.bf16.vlgmr.msra.gmra.mrb[28].mxu1 %v456_v15  ;;  %3754 = vmatpush3.bf16.msra.mxu0 %v4527_v28 }
 0x168   : > { %2429 = vmatpush1.bf16.msra.mxu1 %v4521_v22  ;;  %2369 = vmatprep.mubr.bf16.mxu1 %v464_v17 }
 0x169   : > { %3755 = vmatprep.subr.bf16.mxu0 %v4528_v29 }
 0x16a   : > { %1966 = vmatmul.mubr.bf16.gmra.mrb[4].mxu0 %v463_v30 }
 0x16b   : > { %1975 = vmatprep.mubr.bf16.mxu0 %v471_v31  ;;  %3756 = vmatpush3.bf16.msra.mxu0 %v4529_v32 }
 0x16c   : > { %3757 = vmatprep.subr.bf16.mxu0 %v4530_v33  ;;  %v4534_v33 = vld [vmem:[#allocation7 + $0x68] sm:$0xff]  }
 0x16f   : > { %2370 = vmatmul.mubr.bf16.gmra.mrb[32].mxu1 %v463_v30  ;;  %3758 = vmatpush3.bf16.msra.mxu0 %v4531_v39  ;;  %v4542_v39 = vld [vmem:[#allocation7 + $0xc8] sm:$0xff]  }
 0x170   : > { %2379 = vmatprep.mubr.bf16.mxu1 %v471_v31  ;;  %3759 = vmatprep.subr.bf16.mxu0 %v4532_v40  ;;  %v4543_v40 = vld [vmem:[#allocation7 + $0x88] sm:$0xff]  }
 0x172   : > { %1976 = vmatmul.mubr.bf16.gmra.mrb[8].mxu0 %v470_v41 }
 0x173   : > { %1985 = vmatprep.mubr.bf16.mxu0 %v478_v42  ;;  %3760 = vmatpush3.bf16.msra.mxu0 %v4533_v43  ;;  %v4547_v43 = vld [vmem:[#allocation7 + $0x98] sm:$0xff]  }
 0x174   : > { %3761 = vmatprep.subr.bf16.mxu0 %v4534_v33 }
 0x177   : > { %2380 = vmatmul.mubr.bf16.gmra.mrb[36].mxu1 %v470_v41  ;;  %3762 = vmatpush3.bf16.msra.mxu0 %v4535_v34  ;;  %v4545_v41 = vld [vmem:[#allocation7 + $0x90] sm:$0xff]  }
 0x178   : > { %2389 = vmatprep.mubr.bf16.mxu1 %v478_v42  ;;  %v4546_v42 = vld [vmem:[#allocation7 + $0xd8] sm:$0xff]  }
 0x17a   : > { %v5133_v51 = vpop.f32.mrb[0].mxu1  ;;  %1986 = vmatmul.mubr.bf16.gmra.mrb[12].mxu0 %v477_v49 }
 0x17b   : > { %v5135_v52 = vpop.f32.mrb[1].mxu1  ;;  %1995 = vmatprep.mubr.bf16.mxu0 %v485_v50 }
 0x17c   : > { %v5137_v53 = vpop.f32.mrb[2].mxu1 }
 0x17d   : > { %v5141_v56 = vpop.f32.mrb[3].mxu1 }
 0x17f   : > { %2390 = vmatmul.mubr.bf16.gmra.mrb[40].mxu1 %v477_v49  ;;  %v4555_v49 = vld [vmem:[#allocation7 + $0xb8] sm:$0xff]  }
 0x180   : > { %2399 = vmatprep.mubr.bf16.mxu1 %v485_v50  ;;  %v699_v50 = vlaneseq }
 0x182   : > { %1996 = vmatmul.mubr.bf16.gmra.mrb[16].mxu0 %v484_v60  ;;  %v5147_v1 = vpop.f32.mrb[4].mxu1  ;;  %v5214_v54 = vshrl.u32 %v699_v50, 7 }
 0x183   : > { %2005 = vmatprep.mubr.bf16.mxu0 %v492_v61  ;;  %v5150_v3 = vpop.f32.mrb[5].mxu1 }
 0x184   : > { %v5152_v4 = vpop.f32.mrb[6].mxu1  ;;  %v701_v55 = vsub.s32 0, %v5214_v54  ;;  %v705_v59 = vsub.s32 1, %v5214_v54 }
 0x185   : > { %v5154_v7 = vpop.f32.mrb[7].mxu1 }
 0x187   : > { %2400 = vmatmul.mubr.bf16.gmra.mrb[44].mxu1 %v484_v60  ;;  %v5224_v60 = vrot.slane %v5220_v58, %v701_v55 }
 0x188   : > { %2409 = vmatprep.mubr.bf16.mxu1 %v492_v61  ;;  %v5227_v61 = vrot.slane %v5220_v58, %v705_v59 }
 0x18a   : > { %2006 = vmatmul.mubr.bf16.gmra.mrb[20].mxu0 %v491_v5  ;;  %v5157_v11 = vpop.f32.mrb[8].mxu1 }
 0x18b   : > { %2015 = vmatprep.mubr.bf16.mxu0 %v499_v9  ;;  %v5159_v12 = vpop.f32.mrb[9].mxu1 }
 0x18c   : > { %v5161_v13 = vpop.f32.mrb[10].mxu1 }
 0x18d   : > { %v5163_v15 = vpop.f32.mrb[11].mxu1 }
 0x18f   : > { %2410 = vmatmul.mubr.bf16.gmra.mrb[48].mxu1 %v491_v5 }
 0x190   : > { %2419 = vmatprep.mubr.bf16.mxu1 %v499_v9 }
 0x192   : > { %2016 = vmatmul.mubr.bf16.gmra.mrb[24].mxu0 %v498_v14  ;;  %v5165_v16 = vpop.f32.mrb[12].mxu1 }
 0x193   : > { %v5167_v17 = vpop.f32.mrb[13].mxu1 }
 0x194   : > { %v5169_v18 = vpop.f32.mrb[14].mxu1 }
 0x195   : > { %v5171_v20 = vpop.f32.mrb[15].mxu1 }
 0x197   : > { %2420 = vmatmul.mubr.bf16.gmra.mrb[52].mxu1 %v498_v14 }
 0x198   : > { %2460 = vmatprep.mubr.bf16.mxu1 %v4762_v0 }
 0x19a   : > { %v5174_v21 = vpop.f32.mrb[16].mxu1 }
 0x19b   : > { %v5176_v22 = vpop.f32.mrb[17].mxu1 }
 0x19c   : > { %v5180_v23 = vpop.f32.mrb[18].mxu1 }
 0x19d   : > { %v5182_v24 = vpop.f32.mrb[19].mxu1 }
 0x19f   : > { %3633 = vmatmul.mubr.msk.bf16.vlgmr.msra.gmra.mrb[28].mxu1 %vm1699_vm0, %v5018_v8 }
 0x1a0   : > { %2470 = vmatprep.mubr.bf16.mxu1 %v4762_v0 }
 0x1a2   : > { %v5185_v26 = vpop.f32.mrb[20].mxu1 }
 0x1a3   : > { %v5187_v27 = vpop.f32.mrb[21].mxu1 }
 0x1a4   : > { %v5191_v28 = vpop.f32.mrb[22].mxu1 }
 0x1a5   : > { %v5193_v29 = vpop.f32.mrb[23].mxu1 }
 0x1a7   : > { %3634 = vmatmul.mubr.msk.bf16.gmra.mrb[32].mxu1 %vm1699_vm0, %v5025_v25  ;;  %v4536_v25 = vld [vmem:[#allocation7 + $0x70] sm:$0xff]  }
 0x1a8   : > { %2480 = vmatprep.mubr.bf16.mxu1 %v4762_v0  ;;  %3763 = vmatprep.subr.bf16.mxu0 %v4536_v25 }
 0x1a9   : > { %3764 = vmatpush3.bf16.msra.mxu0 %v4537_v36 }
 0x1aa   : > { %v5196_v8 = vpop.f32.mrb[24].mxu1  ;;  %3765 = vmatprep.subr.bf16.mxu0 %v4538_v37 }
 0x1ab   : > { %v5198_v30 = vpop.f32.mrb[25].mxu1 }
 0x1ac   : > { %v2122_v31 = vpop.f32.mrb[26].mxu1 }
 0x1ad   : > { %v2123_v32 = vpop.f32.mrb[27].mxu1  ;;  %3766 = vmatpush3.bf16.msra.mxu0 %v4539_v38 }
 0x1af   : > { %3635 = vmatmul.mubr.msk.bf16.gmra.mrb[36].mxu1 %vm1699_vm0, %v5032_v35  ;;  %v4540_v35 = vld [vmem:[#allocation7 + $0xc0] sm:$0xff]  }
 0x1b0   : > { %2490 = vmatprep.mubr.bf16.mxu1 %v4762_v0  ;;  %3809 = vmatprep.subr.bf16.mxu1 %v4540_v35 }
 0x1b7   : > { %3636 = vmatmul.mubr.msk.bf16.gmra.mrb[40].mxu1 %vm1699_vm0, %v5039_v46  ;;  %v4541_v46 = vld [vmem:[#allocation7 + $0x80] sm:$0xff]  }
 0x1b8   : > { %2500 = vmatprep.mubr.bf16.mxu1 %v4762_v0  ;;  %3810 = vmatpush3.bf16.msra.mxu1 %v4541_v46 }
 0x1b9   : > { %3811 = vmatprep.subr.bf16.mxu1 %v4542_v39 }
 0x1bc   : > { %3812 = vmatpush3.bf16.msra.mxu1 %v4543_v40 }
 0x1bf   : > { %3637 = vmatmul.mubr.msk.bf16.gmra.mrb[44].mxu1 %vm1699_vm0, %v5046_v57  ;;  %v4544_v57 = vld [vmem:[#allocation7 + $0xd0] sm:$0xff]  }
 0x1c0   : > { %2510 = vmatprep.mubr.bf16.mxu1 %v4762_v0  ;;  %3813 = vmatprep.subr.bf16.mxu1 %v4544_v57 }
 0x1c1   : > { %3814 = vmatpush3.bf16.msra.mxu1 %v4545_v41 }
 0x1c2   : > { %3815 = vmatprep.subr.bf16.mxu1 %v4546_v42 }
 0x1c5   : > { %3816 = vmatpush3.bf16.msra.mxu1 %v4547_v43 }
 0x1c7   : > { %3638 = vmatmul.mubr.msk.bf16.gmra.mrb[48].mxu1 %vm1699_vm0, %v5053_v6  ;;  %v4548_v6 = vld [vmem:[#allocation7 + $0xe0] sm:$0xff]  }
 0x1c8   : > { %2520 = vmatprep.mubr.bf16.mxu1 %v4762_v0  ;;  %v4549_v0 = vld [vmem:[#allocation7 + $0xa0] sm:$0xff]   ;;  %3817 = vmatprep.subr.bf16.mxu1 %v4548_v6 }
 0x1c9   : > { %3818 = vmatpush3.bf16.msra.mxu1 %v4549_v0 }
 0x1ca   : > { %3819 = vmatprep.subr.bf16.mxu1 %v4550_v44 }
 0x1cd   : > { %3820 = vmatpush3.bf16.msra.mxu1 %v4551_v45 }
 0x1ce   : > { %3821 = vmatprep.subr.bf16.mxu1 %v4552_v47 }
 0x1cf   : > { %3639 = vmatmul.mubr.msk.bf16.gmra.mrb[52].mxu1 %vm1699_vm0, %v5061_v19  ;;  %v4553_v19 = vld [vmem:[#allocation7 + $0xb0] sm:$0xff]  }
 0x1d1   : > { %3822 = vmatpush3.bf16.msra.mxu1 %v4553_v19 }
 0x1d2   : > { %3823 = vmatprep.subr.bf16.mxu1 %v4554_v48 }
 0x1d5   : > { %3824 = vmatpush3.bf16.msra.mxu1 %v4555_v49 }
 0x235   : > { %v1957_v62 = vpop.f32.mrb[0].mxu0 }
 0x236   : > { %v3926_v63 = vadd.f32 %v1957_v62, %v5224_v60  ;;  %v1959_v2 = vpop.f32.mrb[1].mxu0 }
 0x237   : > { %v3928_v5 = vadd.f32 %v1959_v2, %v5227_v61  ;;  %v1961_v9 = vpop.f32.mrb[2].mxu0 }
 0x238   : > { %v3927_v10 = vadd.f32 %v3926_v63, %v5133_v51  ;;  %v3930_v14 = vadd.f32 %v1961_v9, %v5224_v60  ;;  %v1963_v31 = vpop.f32.mrb[3].mxu0 }
 0x239   : > { %v3929_v32 = vadd.f32 %v3928_v5, %v5135_v52  ;;  %v3932_v33 = vadd.f32 %v1963_v31, %v5227_v61 }
 0x23a   : > { %v3931_v34 = vadd.f32 %v3930_v14, %v5137_v53  ;;  %v2529_v36 = vmax.f32 %v3927_v10, 0.0 }
 0x23b   : > { %v3933_v25 = vadd.f32 %v3932_v33, %v5141_v56  ;;  %v2530_v38 = vmax.f32 %v3929_v32, 0.0 }
 0x23c   : > { %v2533_v37 = vmax.f32 %v3931_v34, 0.0 }
 0x23d   : > { %v2534_v35 = vmax.f32 %v3933_v25, 0.0  ;;  %v1967_v46 = vpop.f32.mrb[4].mxu0 }
 0x23e   : > { %v2581_v39 = vpack.c.bf16 %v2533_v37, %v2529_v36  ;;  %v3934_v40 = vadd.f32 %v1967_v46, %v5224_v60  ;;  %v1969_v51 = vpop.f32.mrb[5].mxu0 }
 0x23f   : > { %v3936_v57 = vadd.f32 %v1969_v51, %v5227_v61  ;;  %v1971_v41 = vpop.f32.mrb[6].mxu0  ;;  %v2582_v42 = vpack.c.bf16 %v2534_v35, %v2530_v38 }
 0x240   : > { %v3935_v52 = vadd.f32 %v3934_v40, %v5147_v1  ;;  %v3938_v43 = vadd.f32 %v1971_v41, %v5224_v60  ;;  %v1973_v53 = vpop.f32.mrb[7].mxu0 }
 0x241   : > { %v3937_v56 = vadd.f32 %v3936_v57, %v5150_v3  ;;  %v3940_v6 = vadd.f32 %v1973_v53, %v5227_v61  ;;  %2904 = vmatprep.mubr.bf16.mxu0 %v2582_v42 }
 0x242   : > { %v3939_v0 = vadd.f32 %v3938_v43, %v5152_v4  ;;  %2905 = vmatmul.mubr.bf16.vlgmr.msra.gmra.mrb[28].mxu0 %v2581_v39  ;;  %v2537_v45 = vmax.f32 %v3935_v52, 0.0 }
 0x243   : > { %v3941_v44 = vadd.f32 %v3940_v6, %v5154_v7  ;;  %v2538_v19 = vmax.f32 %v3937_v56, 0.0 }
 0x244   : > { %v2541_v47 = vmax.f32 %v3939_v0, 0.0 }
 0x245   : > { %v2542_v48 = vmax.f32 %v3941_v44, 0.0  ;;  %v1977_v49 = vpop.f32.mrb[8].mxu0 }
 0x246   : > { %v3942_v1 = vadd.f32 %v1977_v49, %v5224_v60  ;;  %v1979_v50 = vpop.f32.mrb[9].mxu0  ;;  %v2585_v55 = vpack.c.bf16 %v2541_v47, %v2537_v45 }
 0x247   : > { %v3944_v59 = vadd.f32 %v1979_v50, %v5227_v61  ;;  %v1981_v3 = vpop.f32.mrb[10].mxu0  ;;  %v2586_v62 = vpack.c.bf16 %v2542_v48, %v2538_v19 }
 0x248   : > { %v3943_v63 = vadd.f32 %v3942_v1, %v5157_v11  ;;  %v3946_v4 = vadd.f32 %v1981_v3, %v5224_v60  ;;  %v1983_v2 = vpop.f32.mrb[11].mxu0 }
 0x249   : > { %v3945_v7 = vadd.f32 %v3944_v59, %v5159_v12  ;;  %v3948_v5 = vadd.f32 %v1983_v2, %v5227_v61  ;;  %2912 = vmatprep.mubr.bf16.mxu0 %v2586_v62 }
 0x24a   : > { %v3947_v9 = vadd.f32 %v3946_v4, %v5161_v13  ;;  %2913 = vmatmul.mubr.bf16.gmra.mrb[32].mxu0 %v2585_v55  ;;  %v2545_v14 = vmax.f32 %v3943_v63, 0.0 }
 0x24b   : > { %v3949_v10 = vadd.f32 %v3948_v5, %v5163_v15  ;;  %v2546_v32 = vmax.f32 %v3945_v7, 0.0 }
 0x24c   : > { %v2549_v31 = vmax.f32 %v3947_v9, 0.0 }
 0x24d   : > { %v2550_v33 = vmax.f32 %v3949_v10, 0.0  ;;  %v1987_v34 = vpop.f32.mrb[12].mxu0 }
 0x24e   : > { %v3950_v11 = vadd.f32 %v1987_v34, %v5224_v60  ;;  %v1989_v25 = vpop.f32.mrb[13].mxu0  ;;  %v2589_v36 = vpack.c.bf16 %v2549_v31, %v2545_v14 }
 0x24f   : > { %v3952_v37 = vadd.f32 %v1989_v25, %v5227_v61  ;;  %v1991_v12 = vpop.f32.mrb[14].mxu0  ;;  %v2590_v38 = vpack.c.bf16 %v2550_v33, %v2546_v32 }
 0x250   : > { %v3951_v35 = vadd.f32 %v3950_v11, %v5165_v16  ;;  %v3954_v13 = vadd.f32 %v1991_v12, %v5224_v60  ;;  %v1993_v46 = vpop.f32.mrb[15].mxu0 }
 0x251   : > { %v3953_v15 = vadd.f32 %v3952_v37, %v5167_v17  ;;  %v3956_v39 = vadd.f32 %v1993_v46, %v5227_v61  ;;  %2920 = vmatprep.mubr.bf16.mxu0 %v2590_v38 }
 0x252   : > { %v3955_v40 = vadd.f32 %v3954_v13, %v5169_v18  ;;  %2921 = vmatmul.mubr.bf16.gmra.mrb[36].mxu0 %v2589_v36  ;;  %v2553_v57 = vmax.f32 %v3951_v35, 0.0  ;;  %v713_v13 = vsub.s32 3, %v5214_v54 }
 0x253   : > { %v3957_v51 = vadd.f32 %v3956_v39, %v5171_v20  ;;  %v2554_v42 = vmax.f32 %v3953_v15, 0.0 }
 0x254   : > { %v2557_v41 = vmax.f32 %v3955_v40, 0.0 }
 0x255   : > { %v2558_v52 = vmax.f32 %v3957_v51, 0.0  ;;  %v1997_v43 = vpop.f32.mrb[16].mxu0 }
 0x256   : > { %v3958_v16 = vadd.f32 %v1997_v43, %v5224_v60  ;;  %v1999_v53 = vpop.f32.mrb[17].mxu0  ;;  %v2593_v56 = vpack.c.bf16 %v2557_v41, %v2553_v57 }
 0x257   : > { %v3960_v6 = vadd.f32 %v1999_v53, %v5227_v61  ;;  %v2001_v17 = vpop.f32.mrb[18].mxu0  ;;  %v2594_v0 = vpack.c.bf16 %v2558_v52, %v2554_v42 }
 0x258   : > { %v3959_v44 = vadd.f32 %v3958_v16, %v5174_v21  ;;  %v3962_v18 = vadd.f32 %v2001_v17, %v5224_v60  ;;  %v2003_v45 = vpop.f32.mrb[19].mxu0 }
 0x259   : > { %v3961_v20 = vadd.f32 %v3960_v6, %v5176_v22  ;;  %v3964_v47 = vadd.f32 %v2003_v45, %v5227_v61  ;;  %2928 = vmatprep.mubr.bf16.mxu0 %v2594_v0 }
 0x25a   : > { %v3963_v19 = vadd.f32 %v3962_v18, %v5180_v23  ;;  %2929 = vmatmul.mubr.bf16.gmra.mrb[40].mxu0 %v2593_v56  ;;  %v2561_v49 = vmax.f32 %v3959_v44, 0.0 }
 0x25b   : > { %v3965_v48 = vadd.f32 %v3964_v47, %v5182_v24  ;;  %v2562_v50 = vmax.f32 %v3961_v20, 0.0 }
 0x25c   : > { %v2565_v1 = vmax.f32 %v3963_v19, 0.0 }
 0x25d   : > { %v2566_v55 = vmax.f32 %v3965_v48, 0.0  ;;  %v2007_v59 = vpop.f32.mrb[20].mxu0 }
 0x25e   : > { %v3966_v21 = vadd.f32 %v2007_v59, %v5224_v60  ;;  %v2009_v3 = vpop.f32.mrb[21].mxu0  ;;  %v2597_v62 = vpack.c.bf16 %v2565_v1, %v2561_v49 }
 0x25f   : > { %v3968_v63 = vadd.f32 %v2009_v3, %v5227_v61  ;;  %v2011_v22 = vpop.f32.mrb[22].mxu0  ;;  %v2598_v4 = vpack.c.bf16 %v2566_v55, %v2562_v50 }
 0x260   : > { %v3967_v2 = vadd.f32 %v3966_v21, %v5185_v26  ;;  %v3970_v23 = vadd.f32 %v2011_v22, %v5224_v60  ;;  %v2013_v7 = vpop.f32.mrb[23].mxu0 }
 0x261   : > { %v3969_v24 = vadd.f32 %v3968_v63, %v5187_v27  ;;  %v3972_v5 = vadd.f32 %v2013_v7, %v5227_v61  ;;  %2936 = vmatprep.mubr.bf16.mxu0 %v2598_v4 }
 0x262   : > { %v3971_v9 = vadd.f32 %v3970_v23, %v5191_v28  ;;  %2937 = vmatmul.mubr.bf16.gmra.mrb[44].mxu0 %v2597_v62  ;;  %v2569_v14 = vmax.f32 %v3967_v2, 0.0 }
 0x263   : > { %v3973_v10 = vadd.f32 %v3972_v5, %v5193_v29  ;;  %v2570_v32 = vmax.f32 %v3969_v24, 0.0  ;;  %v709_v29 = vsub.s32 2, %v5214_v54 }
 0x264   : > { %v2573_v31 = vmax.f32 %v3971_v9, 0.0 }
 0x265   : > { %v2574_v33 = vmax.f32 %v3973_v10, 0.0  ;;  %v2017_v34 = vpop.f32.mrb[24].mxu0  ;;  %v5284_v15 = vrot.slane %v5220_v58, %v709_v29 }
 0x266   : > { %v3974_v26 = vadd.f32 %v2017_v34, %v5224_v60  ;;  %v2019_v11 = vpop.f32.mrb[25].mxu0  ;;  %v2601_v25 = vpack.c.bf16 %v2573_v31, %v2569_v14 }
 0x267   : > { %v3976_v36 = vadd.f32 %v2019_v11, %v5227_v61  ;;  %v2021_v27 = vpop.f32.mrb[26].mxu0  ;;  %v2602_v37 = vpack.c.bf16 %v2574_v33, %v2570_v32  ;;  %v5287_v61 = vrot.slane %v5220_v58, %v713_v13 }
 0x268   : > { %v3975_v12 = vadd.f32 %v3974_v26, %v5196_v8  ;;  %v2022_v38 = vpop.f32.mrb[27].mxu0 }
 0x269   : > { %v3977_v28 = vadd.f32 %v3976_v36, %v5198_v30  ;;  %2944 = vmatprep.mubr.bf16.mxu0 %v2602_v37 }
 0x26a   : > { %2945 = vmatmul.mubr.bf16.gmra.mrb[48].mxu0 %v2601_v25  ;;  %v2577_v46 = vmax.f32 %v3975_v12, 0.0 }
 0x26b   : > { %v2578_v35 = vmax.f32 %v3977_v28, 0.0 }
 0x26c   : > { %v2605_v8 = vpack.c.bf16 %v2577_v46, %v2577_v46 }
 0x26d   : > { %v2606_v60 = vpack.c.bf16 %v2578_v35, %v2578_v35 }
 0x26f   : > { %2952 = vmatprep.mubr.bf16.mxu0 %v2606_v60 }
 0x272   : > { %v2462_v39 = vpop.f32.mrb[28].mxu1  ;;  %2953 = vmatmul.mubr.bf16.gmra.mrb[52].mxu0 %v2605_v8 }
 0x273   : > { %v3978_v30 = vadd.f32 %v2462_v39, %v5284_v15  ;;  %v2464_v40 = vpop.f32.mrb[29].mxu1 }
 0x274   : > { %v3979_v51 = vadd.f32 %v2464_v40, %v5287_v61  ;;  %v2466_v57 = vpop.f32.mrb[30].mxu1 }
 0x275   : > { %v3980_v54 = vadd.f32 %v2466_v57, %v5284_v15  ;;  %v2468_v41 = vpop.f32.mrb[31].mxu1  ;;  %v2531_v52 = vmax.f32 %v3978_v30, 0.0 }
 0x276   : > { %v3981_v42 = vadd.f32 %v2468_v41, %v5287_v61  ;;  %v2532_v16 = vmax.f32 %v3979_v51, 0.0 }
 0x277   : > { %v2535_v43 = vmax.f32 %v3980_v54, 0.0 }
 0x278   : > { %v2536_v53 = vmax.f32 %v3981_v42, 0.0 }
 0x279   : > { %v2583_v58 = vpack.c.bf16 %v2535_v43, %v2531_v52 }
 0x27a   : > { %v2584_v56 = vpack.c.bf16 %v2536_v53, %v2532_v16  ;;  %v2472_v6 = vpop.f32.mrb[32].mxu1 }
 0x27b   : > { %v3982_v17 = vadd.f32 %v2472_v6, %v5284_v15  ;;  %v2474_v0 = vpop.f32.mrb[33].mxu1 }
 0x27c   : > { %v3983_v44 = vadd.f32 %v2474_v0, %v5287_v61  ;;  %v2476_v18 = vpop.f32.mrb[34].mxu1  ;;  %2992 = vmatprep.mubr.bf16.mxu1 %v2584_v56 }
 0x27d   : > { %v3984_v45 = vadd.f32 %v2476_v18, %v5284_v15  ;;  %v2478_v20 = vpop.f32.mrb[35].mxu1  ;;  %2993 = vmatmul.mubr.bf16.vlgmr.msra.gmra.mrb[56].mxu1 %v2583_v58  ;;  %v2539_v19 = vmax.f32 %v3982_v17, 0.0 }
 0x27e   : > { %v3985_v47 = vadd.f32 %v2478_v20, %v5287_v61  ;;  %v2540_v49 = vmax.f32 %v3983_v44, 0.0 }
 0x27f   : > { %v2543_v48 = vmax.f32 %v3984_v45, 0.0 }
 0x280   : > { %v2544_v1 = vmax.f32 %v3985_v47, 0.0 }
 0x281   : > { %v2587_v50 = vpack.c.bf16 %v2543_v48, %v2539_v19 }
 0x282   : > { %v2588_v55 = vpack.c.bf16 %v2544_v1, %v2540_v49  ;;  %v2482_v59 = vpop.f32.mrb[36].mxu1 }
 0x283   : > { %v3986_v21 = vadd.f32 %v2482_v59, %v5284_v15  ;;  %v2484_v3 = vpop.f32.mrb[37].mxu1 }
 0x284   : > { %v3987_v62 = vadd.f32 %v2484_v3, %v5287_v61  ;;  %v2486_v63 = vpop.f32.mrb[38].mxu1  ;;  %3000 = vmatprep.mubr.bf16.mxu1 %v2588_v55  ;;  %v4556_v55 = vld [vmem:[#allocation8] sm:$0xff]  }
 0x285   : > { %v3988_v22 = vadd.f32 %v2486_v63, %v5284_v15  ;;  %v2488_v4 = vpop.f32.mrb[39].mxu1  ;;  %3001 = vmatmul.mubr.bf16.gmra.mrb[60].mxu1 %v2587_v50  ;;  %v2547_v23 = vmax.f32 %v3986_v21, 0.0  ;;  %v4763_v21 = vmov 0.0  }
 0x286   : > { %v3989_v2 = vadd.f32 %v2488_v4, %v5287_v61  ;;  %v2548_v24 = vmax.f32 %v3987_v62, 0.0  ;;  %3882 = vmatprep.subr.bf16.mxu0 %v4763_v21  ;;  %v4559_v4 = vld [vmem:[#allocation8 + $0x18] sm:$0xff]   ;;  %3898 = vmatprep.mubr.msk.bf16.mxu0 %vm4764_vm1, %v4763_v21 }
 0x287   : > { %v2551_v7 = vmax.f32 %v3988_v22, 0.0  ;;  %3883 = vmatpush3.bf16.msra.mxu0 %v4556_v55 }
 0x288   : > { %v2552_v5 = vmax.f32 %v3989_v2, 0.0  ;;  %3884 = vmatprep.subr.bf16.mxu0 %v4763_v21  ;;  %v4560_v2 = vld [vmem:[#allocation8 + $0x20] sm:$0xff]  }
 0x289   : > { %v2591_v9 = vpack.c.bf16 %v2551_v7, %v2547_v23  ;;  %v4561_v23 = vld [vmem:[#allocation8 + $0x28] sm:$0xff]   ;;  %v4562_v7 = vld [vmem:[#allocation8 + $0x30] sm:$0xff]  }
 0x28a   : > { %v2592_v10 = vpack.c.bf16 %v2552_v5, %v2548_v24  ;;  %v2492_v14 = vpop.f32.mrb[40].mxu1  ;;  %v4563_v24 = vld [vmem:[#allocation8 + $0x38] sm:$0xff]  }
 0x28b   : > { %v3990_v31 = vadd.f32 %v2492_v14, %v5284_v15  ;;  %v2494_v32 = vpop.f32.mrb[41].mxu1 }
 0x28c   : > { %v3991_v33 = vadd.f32 %v2494_v32, %v5287_v61  ;;  %v2496_v34 = vpop.f32.mrb[42].mxu1  ;;  %3008 = vmatprep.mubr.bf16.mxu1 %v2592_v10 }
 0x28d   : > { %v3992_v26 = vadd.f32 %v2496_v34, %v5284_v15  ;;  %v2498_v11 = vpop.f32.mrb[43].mxu1  ;;  %3009 = vmatmul.mubr.bf16.gmra.mrb[64].mxu1 %v2591_v9  ;;  %v2555_v36 = vmax.f32 %v3990_v31, 0.0 }
 0x28e   : > { %v3993_v25 = vadd.f32 %v2498_v11, %v5287_v61  ;;  %v2556_v37 = vmax.f32 %v3991_v33, 0.0 }
 0x28f   : > { %v2559_v27 = vmax.f32 %v3992_v26, 0.0 }
 0x290   : > { %v2560_v12 = vmax.f32 %v3993_v25, 0.0 }
 0x291   : > { %v2595_v38 = vpack.c.bf16 %v2559_v27, %v2555_v36 }
 0x292   : > { %v2596_v28 = vpack.c.bf16 %v2560_v12, %v2556_v37  ;;  %v2502_v29 = vpop.f32.mrb[44].mxu1 }
 0x293   : > { %v3994_v35 = vadd.f32 %v2502_v29, %v5284_v15  ;;  %v2504_v13 = vpop.f32.mrb[45].mxu1 }
 0x294   : > { %v3995_v46 = vadd.f32 %v2504_v13, %v5287_v61  ;;  %v2506_v60 = vpop.f32.mrb[46].mxu1  ;;  %3016 = vmatprep.mubr.bf16.mxu1 %v2596_v28 }
 0x295   : > { %v3996_v8 = vadd.f32 %v2506_v60, %v5284_v15  ;;  %v2508_v39 = vpop.f32.mrb[47].mxu1  ;;  %3017 = vmatmul.mubr.bf16.gmra.mrb[68].mxu1 %v2595_v38  ;;  %v2563_v40 = vmax.f32 %v3994_v35, 0.0 }
 0x296   : > { %v3997_v30 = vadd.f32 %v2508_v39, %v5287_v61  ;;  %v2564_v57 = vmax.f32 %v3995_v46, 0.0 }
 0x297   : > { %v2567_v51 = vmax.f32 %v3996_v8, 0.0 }
 0x298   : > { %v2568_v54 = vmax.f32 %v3997_v30, 0.0 }
 0x299   : > { %v2599_v41 = vpack.c.bf16 %v2567_v51, %v2563_v40 }
 0x29a   : > { %v2600_v42 = vpack.c.bf16 %v2568_v54, %v2564_v57  ;;  %v2512_v52 = vpop.f32.mrb[48].mxu1 }
 0x29b   : > { %v3998_v43 = vadd.f32 %v2512_v52, %v5284_v15  ;;  %v2514_v16 = vpop.f32.mrb[49].mxu1 }
 0x29c   : > { %v3999_v53 = vadd.f32 %v2514_v16, %v5287_v61  ;;  %v2516_v58 = vpop.f32.mrb[50].mxu1  ;;  %3024 = vmatprep.mubr.bf16.mxu1 %v2600_v42 }
 0x29d   : > { %v4000_v56 = vadd.f32 %v2516_v58, %v5284_v15  ;;  %v2518_v6 = vpop.f32.mrb[51].mxu1  ;;  %3025 = vmatmul.mubr.bf16.gmra.mrb[72].mxu1 %v2599_v41  ;;  %v2571_v0 = vmax.f32 %v3998_v43, 0.0 }
 0x29e   : > { %v4001_v17 = vadd.f32 %v2518_v6, %v5287_v61  ;;  %v2572_v18 = vmax.f32 %v3999_v53, 0.0 }
 0x29f   : > { %v2575_v44 = vmax.f32 %v4000_v56, 0.0 }
 0x2a0   : > { %v2576_v45 = vmax.f32 %v4001_v17, 0.0 }
 0x2a1   : > { %v2603_v20 = vpack.c.bf16 %v2575_v44, %v2571_v0 }
 0x2a2   : > { %v2604_v47 = vpack.c.bf16 %v2576_v45, %v2572_v18  ;;  %v2522_v19 = vpop.f32.mrb[52].mxu1  ;;  %v5342_v18 = vld [vmem:[%s5456_s4] ss:$0 sm:$0xff] }
 0x2a3   : > { %v4002_v48 = vadd.f32 %v2522_v19, %v5284_v15  ;;  %v2524_v49 = vpop.f32.mrb[53].mxu1  ;;  %v4557_v15 = vld [vmem:[#allocation8 + $0x8] sm:$0xff]  }
 0x2a4   : > { %v4003_v1 = vadd.f32 %v2524_v49, %v5287_v61  ;;  %v2526_v50 = vpop.f32.mrb[54].mxu1  ;;  %3032 = vmatprep.mubr.bf16.mxu1 %v2604_v47  ;;  %3885 = vmatpush3.bf16.msra.mxu0 %v4557_v15  ;;  %v4558_v61 = vld [vmem:[#allocation8 + $0x10] sm:$0xff]  }
 0x2a5   : > { %v2527_v59 = vpop.f32.mrb[55].mxu1  ;;  %3033 = vmatmul.mubr.bf16.gmra.mrb[76].mxu1 %v2603_v20  ;;  %v2579_v62 = vmax.f32 %v4002_v48, 0.0  ;;  %3886 = vmatprep.subr.bf16.mxu0 %v4763_v21 }
 0x2a6   : > { %v2580_v3 = vmax.f32 %v4003_v1, 0.0 }
 0x2a7   : > { %v2607_v22 = vpack.c.bf16 %v2579_v62, %v2579_v62 }
 0x2a8   : > { %v2608_v63 = vpack.c.bf16 %v2580_v3, %v2580_v3  ;;  %3887 = vmatpush3.bf16.msra.mxu0 %v4558_v61 }
 0x2a9   : > { %3888 = vmatprep.subr.bf16.mxu0 %v4763_v21 }
 0x2aa   : > { %3040 = vmatprep.mubr.bf16.mxu1 %v2608_v63 }
 0x2ac   : > { %3889 = vmatpush3.bf16.msra.mxu0 %v4559_v4 }
 0x2ad   : > { %3041 = vmatmul.mubr.bf16.gmra.mrb[80].mxu1 %v2607_v22  ;;  %3890 = vmatprep.subr.bf16.mxu0 %v4763_v21 }
 0x2b0   : > { %3891 = vmatpush3.bf16.msra.mxu0 %v4560_v2 }
 0x2b1   : > { %3892 = vmatprep.subr.bf16.mxu0 %v4763_v21 }
 0x2b4   : > { %3893 = vmatpush3.bf16.msra.mxu0 %v4561_v23 }
 0x2b5   : > { %3894 = vmatprep.subr.bf16.mxu0 %v4763_v21 }
 0x2b8   : > { %3895 = vmatpush3.bf16.msra.mxu0 %v4562_v7 }
 0x2b9   : > { %3896 = vmatprep.subr.bf16.mxu0 %v4763_v21 }
 0x2bc   : > { %3897 = vmatpush3.bf16.msra.mxu0 %v4563_v24 }
 0x315   : > { %v3767_v5 = vpop.f32.mrb[28].mxu0 }
 0x316   : > { %v3768_v9 = vpop.f32.mrb[29].mxu0 }
 0x317   : > { %v3769_v10 = vadd.f32 %v3768_v9, %v3767_v5  ;;  %v3770_v14 = vpop.f32.mrb[30].mxu0 }
 0x318   : > { %v3771_v31 = vpop.f32.mrb[31].mxu0 }
 0x319   : > { %v3772_v32 = vadd.f32 %v3771_v31, %v3770_v14  ;;  %v2907_v47 = vadd.f32 %v3769_v10, %v5342_v18 }
 0x31b   : > { %v2910_v1 = vadd.f32 %v3772_v32, %v5342_v18 }
 0x31d   : > { %v3773_v33 = vpop.f32.mrb[32].mxu0 }
 0x31e   : > { %v3774_v34 = vpop.f32.mrb[33].mxu0 }
 0x31f   : > { %v3775_v26 = vadd.f32 %v3774_v34, %v3773_v33  ;;  %v3776_v11 = vpop.f32.mrb[34].mxu0 }
 0x320   : > { %v3777_v25 = vpop.f32.mrb[35].mxu0 }
 0x321   : > { %v3778_v36 = vadd.f32 %v3777_v25, %v3776_v11  ;;  %v2915_v15 = vadd.f32 %v3775_v26, %v5342_v18 }
 0x323   : > { %v2918_v7 = vadd.f32 %v3778_v36, %v5342_v18 }
 0x325   : > { %v3779_v27 = vpop.f32.mrb[36].mxu0 }
 0x326   : > { %v3780_v37 = vpop.f32.mrb[37].mxu0 }
 0x327   : > { %v3781_v12 = vadd.f32 %v3780_v37, %v3779_v27  ;;  %v3782_v38 = vpop.f32.mrb[38].mxu0 }
 0x328   : > { %v3783_v28 = vpop.f32.mrb[39].mxu0 }
 0x329   : > { %v3784_v29 = vadd.f32 %v3783_v28, %v3782_v38  ;;  %v2923_v33 = vadd.f32 %v3781_v12, %v5342_v18 }
 0x32b   : > { %v2926_v27 = vadd.f32 %v3784_v29, %v5342_v18 }
 0x32d   : > { %v3785_v35 = vpop.f32.mrb[40].mxu0 }
 0x32e   : > { %v3786_v13 = vpop.f32.mrb[41].mxu0 }
 0x32f   : > { %v5325_v46 = vadd.f32 %v3786_v13, %v3785_v35  ;;  %v3788_v60 = vpop.f32.mrb[42].mxu0 }
 0x330   : > { %v3789_v8 = vpop.f32.mrb[43].mxu0 }
 0x331   : > { %v5327_v39 = vadd.f32 %v3789_v8, %v3788_v60  ;;  %v2931_v12 = vadd.f32 %v5325_v46, %v5342_v18 }
 0x333   : > { %v2934_v29 = vadd.f32 %v5327_v39, %v5342_v18 }
 0x335   : > { %v3791_v30 = vpop.f32.mrb[44].mxu0 }
 0x336   : > { %v3792_v40 = vpop.f32.mrb[45].mxu0 }
 0x337   : > { %v5329_v51 = vadd.f32 %v3792_v40, %v3791_v30  ;;  %v3794_v57 = vpop.f32.mrb[46].mxu0 }
 0x338   : > { %v3795_v54 = vpop.f32.mrb[47].mxu0 }
 0x339   : > { %v5331_v41 = vadd.f32 %v3795_v54, %v3794_v57  ;;  %v2939_v46 = vadd.f32 %v5329_v51, %v5342_v18 }
 0x33b   : > { %v2942_v39 = vadd.f32 %v5331_v41, %v5342_v18 }
 0x33d   : > { %v3797_v42 = vpop.f32.mrb[48].mxu0 }
 0x33e   : > { %v3798_v52 = vpop.f32.mrb[49].mxu0 }
 0x33f   : > { %v5333_v43 = vadd.f32 %v3798_v52, %v3797_v42  ;;  %v3800_v16 = vpop.f32.mrb[50].mxu0 }
 0x340   : > { %v3801_v53 = vpop.f32.mrb[51].mxu0 }
 0x341   : > { %v5335_v58 = vadd.f32 %v3801_v53, %v3800_v16  ;;  %v2947_v51 = vadd.f32 %v5333_v43, %v5342_v18 }
 0x343   : > { %v2950_v41 = vadd.f32 %v5335_v58, %v5342_v18 }
 0x345   : > { %v3803_v56 = vpop.f32.mrb[52].mxu0 }
 0x346   : > { %v3804_v6 = vpop.f32.mrb[53].mxu0 }
 0x347   : > { %v5337_v17 = vadd.f32 %v3804_v6, %v3803_v56  ;;  %v3806_v0 = vpop.f32.mrb[54].mxu0 }
 0x348   : > { %v3807_v44 = vpop.f32.mrb[55].mxu0 }
 0x349   : > { %v2955_v43 = vadd.f32 %v5337_v17, %v5342_v18 }
 0x350   : > { %v3825_v45 = vpop.f32.mrb[56].mxu1 }
 0x351   : > { %v3826_v20 = vpop.f32.mrb[57].mxu1 }
 0x352   : > { %v3827_v19 = vadd.f32 %v3826_v20, %v3825_v45  ;;  %v3828_v48 = vpop.f32.mrb[58].mxu1 }
 0x353   : > { %v3829_v49 = vpop.f32.mrb[59].mxu1 }
 0x354   : > { %v2995_v50 = vadd.f32 %v3827_v19, %v2907_v47  ;;  %v3830_v55 = vadd.f32 %v3829_v49, %v3828_v48 }
 0x356   : > { %v2998_v59 = vadd.f32 %v3830_v55, %v2910_v1  ;;  %v3048_v3 = vmax.f32 %v2995_v50, 0.0 }
 0x358   : > { %v3049_v62 = vmax.f32 %v2998_v59, 0.0  ;;  %v3831_v63 = vpop.f32.mrb[60].mxu1 }
 0x359   : > { %v3832_v22 = vpop.f32.mrb[61].mxu1 }
 0x35a   : > { %v3061_v61 = vpack.c.bf16 %v3049_v62, %v3048_v3  ;;  %v3833_v4 = vadd.f32 %v3832_v22, %v3831_v63  ;;  %v3834_v2 = vpop.f32.mrb[62].mxu1 }
 0x35b   : > { %v3835_v23 = vpop.f32.mrb[63].mxu1 }
 0x35c   : > { %v3003_v24 = vadd.f32 %v3833_v4, %v2915_v15  ;;  %v3836_v5 = vadd.f32 %v3835_v23, %v3834_v2  ;;  %3899 = vmatmul.mubr.bf16.vlgmr.msra.gmra.mrb[56].mxu0 %v3061_v61 }
 0x35d   : > { %3902 = vmatprep.mubr.msk.bf16.mxu0 %vm4764_vm1, %v4763_v21 }
 0x35e   : > { %v3006_v9 = vadd.f32 %v3836_v5, %v2918_v7  ;;  %v3050_v10 = vmax.f32 %v3003_v24, 0.0 }
 0x360   : > { %v3051_v14 = vmax.f32 %v3006_v9, 0.0  ;;  %v3837_v31 = vpop.f32.mrb[64].mxu1 }
 0x361   : > { %v3838_v32 = vpop.f32.mrb[65].mxu1 }
 0x362   : > { %v3839_v34 = vadd.f32 %v3838_v32, %v3837_v31  ;;  %v3840_v26 = vpop.f32.mrb[66].mxu1  ;;  %v3062_v11 = vpack.c.bf16 %v3051_v14, %v3050_v10  ;;  %v3673_v32 = vld [vmem:[%s5458_s6] ss:$0 sm:$0xff] }
 0x363   : > { %v3841_v25 = vpop.f32.mrb[67].mxu1 }
 0x364   : > { %v3011_v36 = vadd.f32 %v3839_v34, %v2923_v33  ;;  %v3842_v37 = vadd.f32 %v3841_v25, %v3840_v26  ;;  %3903 = vmatmul.mubr.bf16.gmra.mrb[60].mxu0 %v3062_v11 }
 0x365   : > { %3906 = vmatprep.mubr.msk.bf16.mxu0 %vm4764_vm1, %v4763_v21 }
 0x366   : > { %v3014_v38 = vadd.f32 %v3842_v37, %v2926_v27  ;;  %v3052_v28 = vmax.f32 %v3011_v36, 0.0 }
 0x368   : > { %v3053_v35 = vmax.f32 %v3014_v38, 0.0  ;;  %v3843_v13 = vpop.f32.mrb[68].mxu1 }
 0x369   : > { %v3844_v60 = vpop.f32.mrb[69].mxu1 }
 0x36a   : > { %v3845_v8 = vadd.f32 %v3844_v60, %v3843_v13  ;;  %v3846_v30 = vpop.f32.mrb[70].mxu1  ;;  %v3063_v40 = vpack.c.bf16 %v3053_v35, %v3052_v28 }
 0x36b   : > { %v3847_v57 = vpop.f32.mrb[71].mxu1 }
 0x36c   : > { %v3019_v54 = vadd.f32 %v3845_v8, %v2931_v12  ;;  %v3848_v42 = vadd.f32 %v3847_v57, %v3846_v30  ;;  %3907 = vmatmul.mubr.bf16.gmra.mrb[64].mxu0 %v3063_v40 }
 0x36d   : > { %3910 = vmatprep.mubr.msk.bf16.mxu0 %vm4764_vm1, %v4763_v21 }
 0x36e   : > { %v3022_v52 = vadd.f32 %v3848_v42, %v2934_v29  ;;  %v3054_v16 = vmax.f32 %v3019_v54, 0.0 }
 0x370   : > { %v3055_v53 = vmax.f32 %v3022_v52, 0.0  ;;  %v3849_v56 = vpop.f32.mrb[72].mxu1 }
 0x371   : > { %v3850_v6 = vpop.f32.mrb[73].mxu1 }
 0x372   : > { %v3851_v0 = vadd.f32 %v3850_v6, %v3849_v56  ;;  %v3852_v44 = vpop.f32.mrb[74].mxu1  ;;  %v3064_v45 = vpack.c.bf16 %v3055_v53, %v3054_v16 }
 0x373   : > { %v3853_v20 = vpop.f32.mrb[75].mxu1 }
 0x374   : > { %v3027_v47 = vadd.f32 %v3851_v0, %v2939_v46  ;;  %v3854_v19 = vadd.f32 %v3853_v20, %v3852_v44  ;;  %3911 = vmatmul.mubr.bf16.gmra.mrb[68].mxu0 %v3064_v45 }
 0x375   : > { %3914 = vmatprep.mubr.msk.bf16.mxu0 %vm4764_vm1, %v4763_v21 }
 0x376   : > { %v3030_v48 = vadd.f32 %v3854_v19, %v2942_v39  ;;  %v3056_v49 = vmax.f32 %v3027_v47, 0.0 }
 0x378   : > { %v3057_v1 = vmax.f32 %v3030_v48, 0.0  ;;  %v3855_v50 = vpop.f32.mrb[76].mxu1 }
 0x379   : > { %v3856_v55 = vpop.f32.mrb[77].mxu1 }
 0x37a   : > { %v3857_v59 = vadd.f32 %v3856_v55, %v3855_v50  ;;  %v3858_v3 = vpop.f32.mrb[78].mxu1  ;;  %v3065_v62 = vpack.c.bf16 %v3057_v1, %v3056_v49 }
 0x37b   : > { %v3859_v63 = vpop.f32.mrb[79].mxu1 }
 0x37c   : > { %v3035_v22 = vadd.f32 %v3857_v59, %v2947_v51  ;;  %v3860_v15 = vadd.f32 %v3859_v63, %v3858_v3  ;;  %3915 = vmatmul.mubr.bf16.gmra.mrb[72].mxu0 %v3065_v62 }
 0x37d   : > { %3918 = vmatprep.mubr.msk.bf16.mxu0 %vm4764_vm1, %v4763_v21 }
 0x37e   : > { %v3038_v61 = vadd.f32 %v3860_v15, %v2950_v41  ;;  %v3058_v4 = vmax.f32 %v3035_v22, 0.0 }
 0x380   : > { %v3059_v2 = vmax.f32 %v3038_v61, 0.0  ;;  %v3861_v23 = vpop.f32.mrb[80].mxu1 }
 0x381   : > { %v3862_v7 = vpop.f32.mrb[81].mxu1 }
 0x382   : > { %v3863_v24 = vadd.f32 %v3862_v7, %v3861_v23  ;;  %v3864_v5 = vpop.f32.mrb[82].mxu1  ;;  %v3066_v9 = vpack.c.bf16 %v3059_v2, %v3058_v4 }
 0x383   : > { %v3865_v10 = vpop.f32.mrb[83].mxu1 }
 0x384   : > { %v3043_v58 = vadd.f32 %v3863_v24, %v2955_v43  ;;  %3919 = vmatmul.mubr.bf16.gmra.mrb[76].mxu0 %v3066_v9 }
 0x385   : > { %3922 = vmatprep.mubr.msk.bf16.mxu0 %vm4764_vm1, %v4763_v21 }
 0x386   : > { %v3060_v14 = vmax.f32 %v3043_v58, 0.0 }
 0x388   : > { %v3067_v31 = vpack.c.bf16 %v3060_v14, %v3060_v14 }
 0x38c   : > { %3923 = vmatmul.mubr.bf16.gmra.mrb[80].mxu0 %v3067_v31 }
 0x42f   : > { %v3173_v33 = vpop.f32.mrb[56].mxu0 }
 0x430   : > { %v3900_v34 = vpop.f32.mrb[57].mxu0  ;;  %v3174_v18 = vadd.f32 %v3673_v32, %v3173_v33 }
 0x431   : > { %v3176_v17 = vpop.f32.mrb[58].mxu0 }
 0x432   : > { %v3177_v26 = vadd.f32 %v3673_v32, %v3176_v17  ;;  %v3901_v11 = vpop.f32.mrb[59].mxu0 }
 0x434   : > { %v3719_v25 = vpack.c.bf16 %v3177_v26, %v3174_v18 }
 0x436   : > { %3720 = vst [vmem:[%s5380_s1] sm:$0xff] %v3719_v25  }
 0x437   : > { %v3181_v21 = vpop.f32.mrb[60].mxu0 }
 0x438   : > { %v3904_v27 = vpop.f32.mrb[61].mxu0  ;;  %v3182_v37 = vadd.f32 %v3673_v32, %v3181_v21 }
 0x439   : > { %v3184_v36 = vpop.f32.mrb[62].mxu0 }
 0x43a   : > { %v3185_v38 = vadd.f32 %v3673_v32, %v3184_v36  ;;  %v3905_v28 = vpop.f32.mrb[63].mxu0 }
 0x43c   : > { %v3724_v35 = vpack.c.bf16 %v3185_v38, %v3182_v37 }
 0x43e   : > { %3746 = vst [vmem:[%s5380_s1 + $0x8] sm:$0xff] %v3724_v35  }
 0x43f   : > { %v3189_v13 = vpop.f32.mrb[64].mxu0 }
 0x440   : > { %v3908_v60 = vpop.f32.mrb[65].mxu0  ;;  %v3190_v8 = vadd.f32 %v3673_v32, %v3189_v13 }
 0x441   : > { %v3192_v12 = vpop.f32.mrb[66].mxu0 }
 0x442   : > { %v3193_v30 = vadd.f32 %v3673_v32, %v3192_v12  ;;  %v3909_v40 = vpop.f32.mrb[67].mxu0 }
 0x444   : > { %v3729_v57 = vpack.c.bf16 %v3193_v30, %v3190_v8 }
 0x446   : > { %3747 = vst [vmem:[%s5380_s1 + $0x10] sm:$0xff] %v3729_v57  }
 0x447   : > { %v3197_v29 = vpop.f32.mrb[68].mxu0 }
 0x448   : > { %v3912_v54 = vpop.f32.mrb[69].mxu0  ;;  %v3198_v52 = vadd.f32 %v3673_v32, %v3197_v29 }
 0x449   : > { %v3200_v42 = vpop.f32.mrb[70].mxu0 }
 0x44a   : > { %v3201_v16 = vadd.f32 %v3673_v32, %v3200_v42  ;;  %v3913_v53 = vpop.f32.mrb[71].mxu0 }
 0x44c   : > { %v3734_v56 = vpack.c.bf16 %v3201_v16, %v3198_v52 }
 0x44e   : > { %3748 = vst [vmem:[%s5380_s1 + $0x18] sm:$0xff] %v3734_v56  }
 0x44f   : > { %v3205_v6 = vpop.f32.mrb[72].mxu0 }
 0x450   : > { %v3916_v46 = vpop.f32.mrb[73].mxu0  ;;  %v3206_v44 = vadd.f32 %v3673_v32, %v3205_v6 }
 0x451   : > { %v3208_v0 = vpop.f32.mrb[74].mxu0 }
 0x452   : > { %v3209_v45 = vadd.f32 %v3673_v32, %v3208_v0  ;;  %v3917_v20 = vpop.f32.mrb[75].mxu0 }
 0x454   : > { %v3739_v39 = vpack.c.bf16 %v3209_v45, %v3206_v44 }
 0x456   : > { %3749 = vst [vmem:[%s5380_s1 + $0x20] sm:$0xff] %v3739_v39  }
 0x457   : > { %v3213_v47 = vpop.f32.mrb[76].mxu0 }
 0x458   : > { %v3920_v19 = vpop.f32.mrb[77].mxu0  ;;  %v3214_v49 = vadd.f32 %v3673_v32, %v3213_v47 }
 0x459   : > { %v3216_v48 = vpop.f32.mrb[78].mxu0 }
 0x45a   : > { %v3217_v1 = vadd.f32 %v3673_v32, %v3216_v48  ;;  %v3921_v50 = vpop.f32.mrb[79].mxu0 }
 0x45c   : > { %v3744_v55 = vpack.c.bf16 %v3217_v1, %v3214_v49 }
 0x45e   : > { %3750 = vst [vmem:[%s5380_s1 + $0x28] sm:$0xff] %v3744_v55   ;;  %3300 = sbr.rel (!%p5487_p1) target bundleno = 1153 (0x481), region = 68 }
 0x45f   : > { %v3221_v51 = vpop.f32.mrb[80].mxu0 }
 0x460   : > { %v3222_v59 = vadd.f32 %v3673_v32, %v3221_v51  ;;  %v3924_v3 = vpop.f32.mrb[81].mxu0 }
 0x461   : > { %v3224_v62 = vpop.f32.mrb[82].mxu0 }
 0x462   : > { %v3714_v63 = vpack.c.bf16 %v3222_v59, %v3222_v59  ;;  %v3925_v41 = vpop.f32.mrb[83].mxu0 }
 0x464   : > { %3292 = vst [vmem:[%s5380_s1 + $0x30] sm:$0xf] %v3714_v63 }
 0x465   : > { %s5499_s8 = smov (!%p3303_p6, %s3302_s8), 13 }
 0x466   : > { %s5393_s30 = sshll.u32 %s5499_s8, 6 }
 0x467   : > { %s3307_s29 = ssub.s32 832, %s5393_s30 }
 0x468   : > { %3308 = vsyncadd %s3294_s9, %s3307_s29  ;;  %p3696_p3 = scmp.ne.s32.totalorder %s5393_s30, 0  ;;  %s3715_s13 = smul.u32 832, %s4829_s28 }
 0x469   : > { %s3313_s11 = sshll.u32 %s5380_s1, 4  ;;  %s4765_s12 = smov [#allocation10]   ;;  %s5406_s11 = int_to_ptr.vmem [resolvable:$true] %s3313_s11 }
 0x46a   : > { %s5404_s20 = scalar_lea.hbm %s5459_s7, %s3715_s13  ;;  %s4676_s10 = scalar_lea.vmem %s5406_s11, %s5393_s30 }
 0x46b   : > { %p4677_p5 = scmp.ne.s32.totalorder %s5406_s11, %s4676_s10  ;;  %s4680_s15 = sshll.u32 %s4765_s12, 4  ;;  %s4681_s15 = int_to_ptr.vmem [resolvable:$false] %s4680_s15 }
 0x46c   : > { %s4682_s28 = scalar_lea.vmem %s4681_s15, 1664  ;;  %p4683_p0 = scmp.lt.s32.totalorder %s5406_s11, %s4681_s15 }
 0x46d   : > { %p4678_p11 = pnand %p4677_p5, %p3696_p3  ;;  %p4684_p12 = scmp.lt.s32.totalorder %s4682_s28, %s4676_s10 }
 0x46f   : > { %p4679_p13 = pneg %p4678_p11  ;;  %p4685_p7 = por %p4684_p12, %p4683_p0 }
 0x471   : > { %p4686_p2 = pnand %p4685_p7, %p4679_p13 }
 0x473   : > { %4689 = shalt.err (!%p4686_p2)
}
 0x474   : > { %s4690_s18 = scalar_lea.hbm %s5404_s20, %s5393_s30  ;;  %s4694_s21 = scalar_lea.hbm %s5459_s7, 1600 }
 0x475   : > { %p4691_p8 = scmp.ne.s32.totalorder %s5404_s20, %s4690_s18  ;;  %p4695_p1 = scmp.lt.u32.totalorder %s5404_s20, %s5459_s7 }
 0x476   : > { %p4696_p6 = scmp.lt.u32.totalorder %s4694_s21, %s4690_s18  ;;  %p4698_p11 = scmp.lt.u32.totalorder %s4690_s18, %s5404_s20 }
 0x477   : > { %p4692_p9 = pnand %p4691_p8, %p3696_p3 }
 0x478   : > { %p4697_p5 = por %p4696_p6, %p4695_p1 }
 0x479   : > { %p4693_p10 = pneg %p4692_p9 }
 0x47a   : > { %p4699_p13 = por %p4698_p11, %p4697_p5 }
 0x47c   : > { %p4700_p0 = pnand %p4699_p13, %p4693_p10 }
 0x47e   : > { %4703 = shalt.err (!%p4700_p0)
}
 0x47f   : > { %s4766_s22 = smov 64   ;;  %s4767_s8 = smov 4  }
 0x480   : > { %3319 = dma.vmem_to_hbm [thread:$0]  (%p3696_p3), %s5406_s11, %s5393_s30, %s5404_s20, %s3294_s9, %s4766_s22, %s4766_s22, %s4767_s8  }
 0x481 PF: > { %s5488_s29 = sld [smem:[#allocation15_spill]]  ;;  %s5489_s13 = sld [smem:[#allocation18_spill]] }
 0x487   : > { %s3328_s16 = sand.u32 1, %s5488_s29   ;;  %p5490_p12 = scmp.ne.s32.totalorder %s5489_s13, 0 }
 0x488   : > { %s3329_s17 = scalar_lea.sflag [#allocation4], %s3328_s16 }
 0x489   : > { %p4173_p7 = pnand %p3420_p4, %p5490_p12 }
 0x48b   : > { %4733 = dma.done.wait (!%p4173_p7), %s3329_s17, 832  }
 0x48c   : > { %4735 = vsyncadd (!%p4173_p7), %s3329_s17, 4294966464  ;;  %s5491_s27 = sld [smem:[#allocation16_spill]]  ;;  %s5492_s10 = sld [smem:[#allocation17_spill]] }
 0x48d   : > { %s5493_s24 = smov %s4742_s25  ;;  %s5494_s25 = smov %s4746_s26 }
 0x492   : > { %p22_p2 = scmp.ge.s32.totalorder %s5491_s27, 4   ;;  %s5495_s26 = smov %s5492_s10 }
 0x494   :  { %24 = sbr.rel (!%p22_p2) target bundleno = 9 (0x9), region = 105 }
 0x49b   :  { %3334 = vsyncpa [#allocation3], 1 }
 0x49c   :  { %3336 = vsyncpa [#allocation3 + $0x1], 1 }
 0x49d   :  { %3337 = vsyncpa [#allocation6], 1 }
 0x49e   :  { %3338 = vsyncpa [#allocation9], 1 }
 0x49f   :  { %3339 = vsyncpa [#allocation4], 1 }
 0x4a0   :  { %3341 = vsyncpa [#allocation4 + $0x1], 1 }

</bundles_post_ra>
